<compile_context>
chip_gen: v6e
topology: v6e:2x2x1
jax: 0.10.0
libtpu: 0.0.40
codegen_flags: <defaults>
</compile_context>

<pallas_src>
import math
import functools

import jax
import jax.numpy as jnp
import numpy as np
from jax.experimental import pallas as pl
from jax.experimental.pallas import tpu as pltpu


# ------------------------------------------------------------------ kernel ---

def _layernorm(v, g, b, eps=1e-5):
    # fp32 statistics (matches the LayerNorm subclass that upcasts to fp32).
    mu = jnp.mean(v, axis=-1, keepdims=True)
    var = jnp.mean((v - mu) * (v - mu), axis=-1, keepdims=True)
    return (v - mu) * jax.lax.rsqrt(var + eps) * g + b


def _transformer_kernel(x_ref, mask_ref,
                        w_qkv_ref, b_qkv_ref, w_out_ref, b_out_ref,
                        ln1_g_ref, ln1_b_ref,
                        w_fc_ref, b_fc_ref, w_proj_ref, b_proj_ref,
                        ln2_g_ref, ln2_b_ref,
                        o_ref, acc_ref, *, n_head: int):
    """One ResidualAttentionBlock applied to a (B_tile, L, D) slab.

    Grid: (batch_tiles, layers).  acc_ref (fp32 VMEM scratch) carries the
    residual stream across the layer axis; the weight refs hold the current
    layer's block (matmul weights in bf16, biases / LN params in fp32).
    """
    layer = pl.program_id(1)

    @pl.when(layer == 0)
    def _():
        acc_ref[...] = x_ref[...].astype(jnp.float32)

    BT, L, D = acc_ref.shape
    Dh = D // n_head
    scale = 1.0 / math.sqrt(Dh)
    f32, bf16 = jnp.float32, jnp.bfloat16

    x = acc_ref[...]                                 # (BT, L, D) fp32 residual stream
    mask = mask_ref[...].astype(f32)                 # (BT, L, L) additive mask
    xf = x.reshape(BT * L, D)                        # flatten batch for dense matmuls

    # ---- attention branch ----------------------------------------------------
    h = _layernorm(xf, ln1_g_ref[0], ln1_b_ref[0])                       # fp32
    qkv = jnp.dot(h.astype(bf16), w_qkv_ref[0],
                  preferred_element_type=f32) + b_qkv_ref[0]             # (BT*L, 3D)
    qkv = qkv.reshape(BT, L, 3 * D)
    w_out = w_out_ref[0]                                                 # (D, D) bf16

    attn = jnp.zeros((BT * L, D), f32)
    for hd in range(n_head):
        q = (qkv[:, :, hd * Dh:(hd + 1) * Dh] * scale).astype(bf16)      # (BT, L, Dh)
        k = qkv[:, :, D + hd * Dh:D + (hd + 1) * Dh].astype(bf16)
        v = qkv[:, :, 2 * D + hd * Dh:2 * D + (hd + 1) * Dh].astype(bf16)

        s = jnp.einsum('bqd,bkd->bqk', q, k,
                       preferred_element_type=f32) + mask                # (BT, L, L)
        s = s - jnp.max(s, axis=-1, keepdims=True)                       # fp32 softmax
        p = jnp.exp(s)
        # Denominator >= exp(0) > 0 because the row max is subtracted and the
        # additive mask is finite, so the approx reciprocal is safe.
        p = p * pl.reciprocal(jnp.sum(p, axis=-1, keepdims=True), approx=True)

        o = jnp.einsum('bqk,bkd->bqd', p.astype(bf16), v,
                       preferred_element_type=f32)                       # (BT, L, Dh)
        # Fold this head directly through its slice of the output projection
        # (avoids concatenating heads back along the lane dimension).
        attn = attn + jnp.dot(o.reshape(BT * L, Dh).astype(bf16),
                              w_out[hd * Dh:(hd + 1) * Dh, :],
                              preferred_element_type=f32)

    x1 = xf + attn + b_out_ref[0]                                        # fp32 residual

    # ---- MLP branch ------------------------------------------------------------
    h2 = _layernorm(x1, ln2_g_ref[0], ln2_b_ref[0])
    fc = jnp.dot(h2.astype(bf16), w_fc_ref[0],
                 preferred_element_type=f32) + b_fc_ref[0]               # (BT*L, 4D)
    fc = fc * jax.nn.sigmoid(1.702 * fc)                                 # QuickGELU fp32
    mlp = jnp.dot(fc.astype(bf16), w_proj_ref[0],
                  preferred_element_type=f32) + b_proj_ref[0]            # (BT*L, D)

    acc_ref[...] = (x1 + mlp).reshape(BT, L, D)

    @pl.when(layer == pl.num_programs(1) - 1)
    def _():
        o_ref[...] = acc_ref[...].astype(o_ref.dtype)


# ----------------------------------------------------------------- wrapper ---

def _pick_batch_tile(n, cap=8):
    for bt in range(min(n, cap), 0, -1):
        if n % bt == 0:
            return bt
    return 1


def _vmem_limit_bytes(bt, lp, d):
    # double-buffered bf16 matmul weights + fp32 biases/LN for one layer
    w = 2 * (12 * d * d * 2 + 16 * d * 4)
    # residual-stream scratch, x/mask/out blocks, qkv/fc/score temporaries (generous)
    a = bt * lp * (24 * d + 8 * lp) * 4
    est = int(1.5 * (w + a))
    return max(32 * 1024 * 1024, min(est, 100 * 1024 * 1024))


def _stack_params(layer_params):
    """Stack per-layer params on a leading layer axis; cast matmul weights to bf16."""
    stacked = {}
    for k in layer_params[0].keys():
        a = jnp.stack([p[k] for p in layer_params], axis=0)
        stacked[k] = a.astype(jnp.bfloat16) if k.startswith("w_") else a.astype(jnp.float32)
    return stacked


def transformer_forward(x_lnd, attn_mask, layer_params, n_head, *, batch_tile_cap=8):
    """Matches Transformer.forward: x (L, N, D), attn_mask (N, L, L) additive."""
    L, N, D = x_lnd.shape
    n_layers = len(layer_params)
    x = jnp.transpose(x_lnd, (1, 0, 2))                         # (N, L, D)

    # Pad sequence length to a multiple of 8 (sublane alignment); padded keys get a
    # large negative additive bias so they never contribute to softmax.
    Lp = ((L + 7) // 8) * 8
    if Lp != L:
        x = jnp.pad(x, ((0, 0), (0, Lp - L), (0, 0)))
        mask = jnp.pad(attn_mask.astype(jnp.float32),
                       ((0, 0), (0, Lp - L), (0, Lp - L)))
        key_ok = (jnp.arange(Lp) < L)[None, None, :]
        mask = jnp.where(key_ok, mask, -1e9)
    else:
        mask = attn_mask.astype(jnp.float32)

    bt = _pick_batch_tile(N, batch_tile_cap)
    p = _stack_params(layer_params)
    kernel = functools.partial(_transformer_kernel, n_head=n_head)

    xb = lambda b, l: (b, 0, 0)        # activations: indexed by batch tile only
    wb = lambda b, l: (l, 0, 0)        # weights: indexed by layer only

    in_specs = [
        pl.BlockSpec((bt, Lp, D), xb),              # x
        pl.BlockSpec((bt, Lp, Lp), xb),             # mask
        pl.BlockSpec((1, D, 3 * D), wb),            # w_qkv
        pl.BlockSpec((1, 1, 3 * D), wb),            # b_qkv
        pl.BlockSpec((1, D, D), wb),                # w_out
        pl.BlockSpec((1, 1, D), wb),                # b_out
        pl.BlockSpec((1, 1, D), wb),                # ln1_g
        pl.BlockSpec((1, 1, D), wb),                # ln1_b
        pl.BlockSpec((1, D, 4 * D), wb),            # w_fc
        pl.BlockSpec((1, 1, 4 * D), wb),            # b_fc
        pl.BlockSpec((1, 4 * D, D), wb),            # w_proj
        pl.BlockSpec((1, 1, D), wb),                # b_proj
        pl.BlockSpec((1, 1, D), wb),                # ln2_g
        pl.BlockSpec((1, 1, D), wb),                # ln2_b
    ]

    out = pl.pallas_call(
        kernel,
        out_shape=jax.ShapeDtypeStruct((N, Lp, D), x_lnd.dtype),
        grid=(N // bt, n_layers),
        in_specs=in_specs,
        out_specs=pl.BlockSpec((bt, Lp, D), xb),
        scratch_shapes=[pltpu.VMEM((bt, Lp, D), jnp.float32)],   # resident residual stream
        compiler_params=pltpu.CompilerParams(
            dimension_semantics=("parallel", "arbitrary"),
            vmem_limit_bytes=_vmem_limit_bytes(bt, Lp, D)),
    )(x, mask,
      p["w_qkv"], p["b_qkv"], p["w_out"], p["b_out"],
      p["ln1_g"], p["ln1_b"],
      p["w_fc"], p["b_fc"], p["w_proj"], p["b_proj"],
      p["ln2_g"], p["ln2_b"])

    out = out[:, :L, :]
    return jnp.transpose(out, (1, 0, 2))             # -> (L, N, D)


# ---------------------------------------------------------- parameter init ---

def init_layer_params(key, d_model):
    ks = jax.random.split(key, 8)
    s = 0.02
    return {
        # pre-transposed: the kernel computes x @ W + b
        "w_qkv": jax.random.normal(ks[0], (d_model, 3 * d_model), jnp.float32) * s,
        "b_qkv": jax.random.normal(ks[1], (1, 3 * d_model), jnp.float32) * s,
        "w_out": jax.random.normal(ks[2], (d_model, d_model), jnp.float32) * s,
        "b_out": jax.random.normal(ks[3], (1, d_model), jnp.float32) * s,
        "ln1_g": jnp.ones((1, d_model), jnp.float32),
        "ln1_b": jnp.zeros((1, d_model), jnp.float32),
        "w_fc": jax.random.normal(ks[4], (d_model, 4 * d_model), jnp.float32) * s,
        "b_fc": jax.random.normal(ks[5], (1, 4 * d_model), jnp.float32) * s,
        "w_proj": jax.random.normal(ks[6], (4 * d_model, d_model), jnp.float32) * s,
        "b_proj": jax.random.normal(ks[7], (1, d_model), jnp.float32) * s,
        "ln2_g": jnp.ones((1, d_model), jnp.float32),
        "ln2_b": jnp.zeros((1, d_model), jnp.float32),
    }


# ------------------------------------------------------- pure-JAX reference ---

def _ref_block(x_nld, mask, p, n_head):
    N, L, D = x_nld.shape
    Dh = D // n_head

    def ln(v, g, b):
        mu = v.mean(-1, keepdims=True)
        var = ((v - mu) ** 2).mean(-1, keepdims=True)
        return (v - mu) / jnp.sqrt(var + 1e-5) * g + b

    h = ln(x_nld, p["ln1_g"], p["ln1_b"])
    qkv = h @ p["w_qkv"] + p["b_qkv"]
    q, k, v = jnp.split(qkv, 3, axis=-1)
    q = q.reshape(N, L, n_head, Dh).transpose(0, 2, 1, 3)
    k = k.reshape(N, L, n_head, Dh).transpose(0, 2, 1, 3)
    v = v.reshape(N, L, n_head, Dh).transpose(0, 2, 1, 3)
    s = jnp.einsum("nhqd,nhkd->nhqk", q, k) / math.sqrt(Dh) + mask[:, None]
    a = jax.nn.softmax(s, axis=-1)
    o = jnp.einsum("nhqk,nhkd->nhqd", a, v).transpose(0, 2, 1, 3).reshape(N, L, D)
    x = x_nld + o @ p["w_out"] + p["b_out"]
    h2 = ln(x, p["ln2_g"], p["ln2_b"])
    fc = h2 @ p["w_fc"] + p["b_fc"]
    fc = fc * jax.nn.sigmoid(1.702 * fc)
    return x + fc @ p["w_proj"] + p["b_proj"]


def _ref_transformer(x_lnd, mask, layer_params, n_head):
    x = jnp.transpose(x_lnd, (1, 0, 2))
    for p in layer_params:
        x = _ref_block(x, mask, p, n_head)
    return jnp.transpose(x, (1, 0, 2))


# -------------------------------------------------------------------- main ---

if __name__ == "__main__":
    WIDTH, LAYERS, HEADS = 32, 2, 4
    L, N = 8, 2   # seq, batch

    key = jax.random.PRNGKey(0)
    kx, km, kp = jax.random.split(key, 3)

    x = jax.random.normal(kx, (L, N, WIDTH), jnp.float32)          # (L, N, D)
    # Additive float attention mask, broadcast to every head inside the block.
    attn_mask = jax.random.normal(km, (N, L, L), jnp.float32) * 0.1

    layer_keys = jax.random.split(kp, LAYERS)
    layer_params = [init_layer_params(k, WIDTH) for k in layer_keys]

    out = transformer_forward(x, attn_mask, layer_params, HEADS)
    out = jax.block_until_ready(out)

    ref = _ref_transformer(x, attn_mask, layer_params, HEADS)
    # The kernel uses bf16 matmul inputs (fp32 accumulation / softmax / LN /
    # residuals), so compare against the fp32 reference at bf16-level tolerance.
    np.testing.assert_allclose(np.asarray(out), np.asarray(ref), rtol=3e-2, atol=3e-2)

    assert out.shape == (L, N, WIDTH)
    print("KERNEL_OK")
</pallas_src>

<mosaic_0001>
module attributes {stable_mosaic.version = 11 : i64} {
  func.func @_transformer_kernel(%arg0: i32, %arg1: i32, %arg2: memref<2x8x32xf32, #tpu.memory_space<vmem>>, %arg3: memref<2x8x8xf32, #tpu.memory_space<vmem>>, %arg4: memref<1x32x96xbf16, #tpu.memory_space<vmem>>, %arg5: memref<1x1x96xf32, #tpu.memory_space<vmem>>, %arg6: memref<1x32x32xbf16, #tpu.memory_space<vmem>>, %arg7: memref<1x1x32xf32, #tpu.memory_space<vmem>>, %arg8: memref<1x1x32xf32, #tpu.memory_space<vmem>>, %arg9: memref<1x1x32xf32, #tpu.memory_space<vmem>>, %arg10: memref<1x32x128xbf16, #tpu.memory_space<vmem>>, %arg11: memref<1x1x128xf32, #tpu.memory_space<vmem>>, %arg12: memref<1x128x32xbf16, #tpu.memory_space<vmem>>, %arg13: memref<1x1x32xf32, #tpu.memory_space<vmem>>, %arg14: memref<1x1x32xf32, #tpu.memory_space<vmem>>, %arg15: memref<1x1x32xf32, #tpu.memory_space<vmem>>, %arg16: memref<2x8x32xf32, #tpu.memory_space<vmem>>, %arg17: memref<2x8x32xf32, #tpu.memory_space<vmem>>) attributes {dimension_semantics = [#tpu.dimension_semantics<parallel>, #tpu.dimension_semantics<arbitrary>], iteration_bounds = array<i64: 1, 2>, scalar_prefetch = 0 : i64, scratch_operands = 1 : i64, tpu.core_type = #tpu.core_type<tc>, window_params = [{transform_indices = @transform_0, window_bounds = array<i64: 2, 8, 32>}, {transform_indices = @transform_1, window_bounds = array<i64: 2, 8, 8>}, {transform_indices = @transform_2, window_bounds = array<i64: 1, 32, 96>}, {transform_indices = @transform_3, window_bounds = array<i64: 1, 1, 96>}, {transform_indices = @transform_4, window_bounds = array<i64: 1, 32, 32>}, {transform_indices = @transform_5, window_bounds = array<i64: 1, 1, 32>}, {transform_indices = @transform_6, window_bounds = array<i64: 1, 1, 32>}, {transform_indices = @transform_7, window_bounds = array<i64: 1, 1, 32>}, {transform_indices = @transform_8, window_bounds = array<i64: 1, 32, 128>}, {transform_indices = @transform_9, window_bounds = array<i64: 1, 1, 128>}, {transform_indices = @transform_10, window_bounds = array<i64: 1, 128, 32>}, {transform_indices = @transform_11, window_bounds = array<i64: 1, 1, 32>}, {transform_indices = @transform_12, window_bounds = array<i64: 1, 1, 32>}, {transform_indices = @transform_13, window_bounds = array<i64: 1, 1, 32>}, {transform_indices = @transform_14, window_bounds = array<i64: 2, 8, 32>}]} {
    %c0_i32 = arith.constant 0 : i32
    %0 = arith.cmpi eq, %arg1, %c0_i32 : i32
    %1 = arith.extui %0 : i1 to i32
    %c0_i32_0 = arith.constant 0 : i32
    %2 = arith.cmpi ne, %1, %c0_i32_0 : i32
    scf.if %2 {
      %c0_85 = arith.constant 0 : index
      %c0_86 = arith.constant 0 : index
      %c0_87 = arith.constant 0 : index
      %217 = vector.load %arg2[%c0_85, %c0_86, %c0_87] : memref<2x8x32xf32, #tpu.memory_space<vmem>>, vector<2x8x32xf32>
      %c0_88 = arith.constant 0 : index
      %c0_89 = arith.constant 0 : index
      %c0_90 = arith.constant 0 : index
      %218 = vector.load %arg17[%c0_88, %c0_89, %c0_90] : memref<2x8x32xf32, #tpu.memory_space<vmem>>, vector<2x8x32xf32>
      tpu.vector_store %arg17[%c0_88, %c0_89, %c0_90], %217 {strides = array<i32>} : memref<2x8x32xf32, #tpu.memory_space<vmem>>, vector<2x8x32xf32>,
    } else {
    }
    %c0 = arith.constant 0 : index
    %c0_1 = arith.constant 0 : index
    %c0_2 = arith.constant 0 : index
    %3 = vector.load %arg17[%c0, %c0_1, %c0_2] : memref<2x8x32xf32, #tpu.memory_space<vmem>>, vector<2x8x32xf32>
    %c0_3 = arith.constant 0 : index
    %c0_4 = arith.constant 0 : index
    %c0_5 = arith.constant 0 : index
    %4 = vector.load %arg3[%c0_3, %c0_4, %c0_5] : memref<2x8x8xf32, #tpu.memory_space<vmem>>, vector<2x8x8xf32>
    %5 = vector.shape_cast %3 : vector<2x8x32xf32> to vector<16x32xf32>
    %c0_6 = arith.constant 0 : index
    %c0_7 = arith.constant 0 : index
    %c0_8 = arith.constant 0 : index
    %6 = vector.load %arg8[%c0_6, %c0_7, %c0_8] : memref<1x1x32xf32, #tpu.memory_space<vmem>>, vector<1x1x32xf32>
    %7 = vector.shape_cast %6 : vector<1x1x32xf32> to vector<1x32xf32>
    %c0_9 = arith.constant 0 : index
    %c0_10 = arith.constant 0 : index
    %c0_11 = arith.constant 0 : index
    %8 = vector.load %arg9[%c0_9, %c0_10, %c0_11] : memref<1x1x32xf32, #tpu.memory_space<vmem>>, vector<1x1x32xf32>
    %9 = vector.shape_cast %8 : vector<1x1x32xf32> to vector<1x32xf32>
    %cst = arith.constant dense<0.000000e+00> : vector<16xf32>
    %10 = vector.multi_reduction <add>, %5, %cst [1] : vector<16x32xf32> to vector<16xf32>
    %11 = vector.shape_cast %10 : vector<16xf32> to vector<16x1xf32>
    %cst_12 = arith.constant 3.200000e+01 : f32
    %12 = vector.broadcast %cst_12 : f32 to vector<16x1xf32>
    %13 = arith.divf %11, %12 : vector<16x1xf32>
    %14 = vector.broadcast %13 : vector<16x1xf32> to vector<16x32xf32>
    %15 = arith.subf %5, %14 : vector<16x32xf32>
    %16 = vector.broadcast %13 : vector<16x1xf32> to vector<16x32xf32>
    %17 = arith.subf %5, %16 : vector<16x32xf32>
    %18 = arith.mulf %15, %17 : vector<16x32xf32>
    %cst_13 = arith.constant dense<0.000000e+00> : vector<16xf32>
    %19 = vector.multi_reduction <add>, %18, %cst_13 [1] : vector<16x32xf32> to vector<16xf32>
    %20 = vector.shape_cast %19 : vector<16xf32> to vector<16x1xf32>
    %cst_14 = arith.constant 3.200000e+01 : f32
    %21 = vector.broadcast %cst_14 : f32 to vector<16x1xf32>
    %22 = arith.divf %20, %21 : vector<16x1xf32>
    %23 = vector.broadcast %13 : vector<16x1xf32> to vector<16x32xf32>
    %24 = arith.subf %5, %23 : vector<16x32xf32>
    %cst_15 = arith.constant 9.99999974E-6 : f32
    %25 = vector.broadcast %cst_15 : f32 to vector<16x1xf32>
    %26 = arith.addf %22, %25 : vector<16x1xf32>
    %27 = math.rsqrt %26 : vector<16x1xf32>
    %28 = vector.broadcast %27 : vector<16x1xf32> to vector<16x32xf32>
    %29 = arith.mulf %24, %28 : vector<16x32xf32>
    %30 = vector.broadcast %7 : vector<1x32xf32> to vector<16x32xf32>
    %31 = arith.mulf %29, %30 : vector<16x32xf32>
    %32 = vector.broadcast %9 : vector<1x32xf32> to vector<16x32xf32>
    %33 = arith.addf %31, %32 : vector<16x32xf32>
    %34 = arith.truncf %33 : vector<16x32xf32> to vector<16x32xbf16>
    %c0_16 = arith.constant 0 : index
    %c0_17 = arith.constant 0 : index
    %c0_18 = arith.constant 0 : index
    %35 = vector.load %arg4[%c0_16, %c0_17, %c0_18] : memref<1x32x96xbf16, #tpu.memory_space<vmem>>, vector<1x32x96xbf16>
    %36 = vector.shape_cast %35 : vector<1x32x96xbf16> to vector<32x96xbf16>
    %cst_19 = arith.constant dense<0.000000e+00> : vector<16x96xf32>
    %37 = tpu.matmul %34, %36, %cst_19 {dimension_numbers = #tpu.dot_dimension_numbers<[1], [0], [0], [1], [0, 0, 1, 1], [], []>} : vector<16x32xbf16>, vector<32x96xbf16>, vector<16x96xf32> -> vector<16x96xf32>
    %c0_20 = arith.constant 0 : index
    %c0_21 = arith.constant 0 : index
    %c0_22 = arith.constant 0 : index
    %38 = vector.load %arg5[%c0_20, %c0_21, %c0_22] : memref<1x1x96xf32, #tpu.memory_space<vmem>>, vector<1x1x96xf32>
    %39 = vector.shape_cast %38 : vector<1x1x96xf32> to vector<1x96xf32>
    %40 = vector.broadcast %39 : vector<1x96xf32> to vector<16x96xf32>
    %41 = arith.addf %37, %40 : vector<16x96xf32>
    %42 = vector.shape_cast %41 : vector<16x96xf32> to vector<2x8x96xf32>
    %c0_23 = arith.constant 0 : index
    %c0_24 = arith.constant 0 : index
    %c0_25 = arith.constant 0 : index
    %43 = vector.load %arg6[%c0_23, %c0_24, %c0_25] : memref<1x32x32xbf16, #tpu.memory_space<vmem>>, vector<1x32x32xbf16>
    %44 = vector.shape_cast %43 : vector<1x32x32xbf16> to vector<32x32xbf16>
    %cst_26 = arith.constant 0.000000e+00 : f32
    %45 = vector.broadcast %cst_26 : f32 to vector<16x32xf32>
    %46 = vector.extract_strided_slice %42 {offsets = [0, 0, 0], sizes = [2, 8, 8], strides = [1, 1, 1]} : vector<2x8x96xf32> to vector<2x8x8xf32>
    %cst_27 = arith.constant 0.353553385 : f32
    %47 = vector.broadcast %cst_27 : f32 to vector<2x8x8xf32>
    %48 = arith.mulf %46, %47 : vector<2x8x8xf32>
    %49 = arith.truncf %48 : vector<2x8x8xf32> to vector<2x8x8xbf16>
    %50 = vector.extract_strided_slice %42 {offsets = [0, 0, 32], sizes = [2, 8, 8], strides = [1, 1, 1]} : vector<2x8x96xf32> to vector<2x8x8xf32>
    %51 = arith.truncf %50 : vector<2x8x8xf32> to vector<2x8x8xbf16>
    %52 = vector.extract_strided_slice %42 {offsets = [0, 0, 64], sizes = [2, 8, 8], strides = [1, 1, 1]} : vector<2x8x96xf32> to vector<2x8x8xf32>
    %53 = arith.truncf %52 : vector<2x8x8xf32> to vector<2x8x8xbf16>
    "tpu.trace_start"() <{level = 10 : i32, message = "bqd,bkd->bqk"}> : () -> ()
    %cst_28 = arith.constant dense<0.000000e+00> : vector<2x8x8xf32>
    %54 = tpu.matmul %49, %51, %cst_28 {dimension_numbers = #tpu.dot_dimension_numbers<[2], [2], [1], [1], [0, 0, 0, 1, 1, 1], [0], [0]>} : vector<2x8x8xbf16>, vector<2x8x8xbf16>, vector<2x8x8xf32> -> vector<2x8x8xf32>
    "tpu.trace_stop"() : () -> ()
    %55 = arith.addf %54, %4 : vector<2x8x8xf32>
    %cst_29 = arith.constant dense<0xFF800000> : vector<2x8xf32>
    %56 = vector.multi_reduction <maximumf>, %55, %cst_29 [2] : vector<2x8x8xf32> to vector<2x8xf32>
    %57 = vector.shape_cast %56 : vector<2x8xf32> to vector<2x8x1xf32>
    %58 = vector.broadcast %57 : vector<2x8x1xf32> to vector<2x8x8xf32>
    %59 = arith.subf %55, %58 : vector<2x8x8xf32>
    %60 = math.exp %59 : vector<2x8x8xf32>
    %cst_30 = arith.constant dense<0.000000e+00> : vector<2x8xf32>
    %61 = vector.multi_reduction <add>, %60, %cst_30 [2] : vector<2x8x8xf32> to vector<2x8xf32>
    %62 = vector.shape_cast %61 : vector<2x8xf32> to vector<2x8x1xf32>
    %63 = tpu.reciprocal %62 {approx = true} : vector<2x8x1xf32> -> vector<2x8x1xf32>
    %64 = vector.broadcast %63 : vector<2x8x1xf32> to vector<2x8x8xf32>
    %65 = arith.mulf %60, %64 : vector<2x8x8xf32>
    %66 = arith.truncf %65 : vector<2x8x8xf32> to vector<2x8x8xbf16>
    "tpu.trace_start"() <{level = 10 : i32, message = "bqk,bkd->bqd"}> : () -> ()
    %cst_31 = arith.constant dense<0.000000e+00> : vector<2x8x8xf32>
    %67 = tpu.matmul %66, %53, %cst_31 {dimension_numbers = #tpu.dot_dimension_numbers<[2], [1], [1], [2], [0, 0, 0, 1, 1, 2], [0], [0]>} : vector<2x8x8xbf16>, vector<2x8x8xbf16>, vector<2x8x8xf32> -> vector<2x8x8xf32>
    "tpu.trace_stop"() : () -> ()
    %68 = vector.shape_cast %67 : vector<2x8x8xf32> to vector<16x8xf32>
    %69 = arith.truncf %68 : vector<16x8xf32> to vector<16x8xbf16>
    %70 = vector.extract_strided_slice %44 {offsets = [0, 0], sizes = [8, 32], strides = [1, 1]} : vector<32x32xbf16> to vector<8x32xbf16>
    %cst_32 = arith.constant dense<0.000000e+00> : vector<16x32xf32>
    %71 = tpu.matmul %69, %70, %cst_32 {dimension_numbers = #tpu.dot_dimension_numbers<[1], [0], [0], [1], [0, 0, 1, 1], [], []>} : vector<16x8xbf16>, vector<8x32xbf16>, vector<16x32xf32> -> vector<16x32xf32>
    %72 = arith.addf %45, %71 : vector<16x32xf32>
    %73 = vector.extract_strided_slice %42 {offsets = [0, 0, 8], sizes = [2, 8, 8], strides = [1, 1, 1]} : vector<2x8x96xf32> to vector<2x8x8xf32>
    %cst_33 = arith.constant 0.353553385 : f32
    %74 = vector.broadcast %cst_33 : f32 to vector<2x8x8xf32>
    %75 = arith.mulf %73, %74 : vector<2x8x8xf32>
    %76 = arith.truncf %75 : vector<2x8x8xf32> to vector<2x8x8xbf16>
    %77 = vector.extract_strided_slice %42 {offsets = [0, 0, 40], sizes = [2, 8, 8], strides = [1, 1, 1]} : vector<2x8x96xf32> to vector<2x8x8xf32>
    %78 = arith.truncf %77 : vector<2x8x8xf32> to vector<2x8x8xbf16>
    %79 = vector.extract_strided_slice %42 {offsets = [0, 0, 72], sizes = [2, 8, 8], strides = [1, 1, 1]} : vector<2x8x96xf32> to vector<2x8x8xf32>
    %80 = arith.truncf %79 : vector<2x8x8xf32> to vector<2x8x8xbf16>
    "tpu.trace_start"() <{level = 10 : i32, message = "bqd,bkd->bqk"}> : () -> ()
    %cst_34 = arith.constant dense<0.000000e+00> : vector<2x8x8xf32>
    %81 = tpu.matmul %76, %78, %cst_34 {dimension_numbers = #tpu.dot_dimension_numbers<[2], [2], [1], [1], [0, 0, 0, 1, 1, 1], [0], [0]>} : vector<2x8x8xbf16>, vector<2x8x8xbf16>, vector<2x8x8xf32> -> vector<2x8x8xf32>
    "tpu.trace_stop"() : () -> ()
    %82 = arith.addf %81, %4 : vector<2x8x8xf32>
    %cst_35 = arith.constant dense<0xFF800000> : vector<2x8xf32>
    %83 = vector.multi_reduction <maximumf>, %82, %cst_35 [2] : vector<2x8x8xf32> to vector<2x8xf32>
    %84 = vector.shape_cast %83 : vector<2x8xf32> to vector<2x8x1xf32>
    %85 = vector.broadcast %84 : vector<2x8x1xf32> to vector<2x8x8xf32>
    %86 = arith.subf %82, %85 : vector<2x8x8xf32>
    %87 = math.exp %86 : vector<2x8x8xf32>
    %cst_36 = arith.constant dense<0.000000e+00> : vector<2x8xf32>
    %88 = vector.multi_reduction <add>, %87, %cst_36 [2] : vector<2x8x8xf32> to vector<2x8xf32>
    %89 = vector.shape_cast %88 : vector<2x8xf32> to vector<2x8x1xf32>
    %90 = tpu.reciprocal %89 {approx = true} : vector<2x8x1xf32> -> vector<2x8x1xf32>
    %91 = vector.broadcast %90 : vector<2x8x1xf32> to vector<2x8x8xf32>
    %92 = arith.mulf %87, %91 : vector<2x8x8xf32>
    %93 = arith.truncf %92 : vector<2x8x8xf32> to vector<2x8x8xbf16>
    "tpu.trace_start"() <{level = 10 : i32, message = "bqk,bkd->bqd"}> : () -> ()
    %cst_37 = arith.constant dense<0.000000e+00> : vector<2x8x8xf32>
    %94 = tpu.matmul %93, %80, %cst_37 {dimension_numbers = #tpu.dot_dimension_numbers<[2], [1], [1], [2], [0, 0, 0, 1, 1, 2], [0], [0]>} : vector<2x8x8xbf16>, vector<2x8x8xbf16>, vector<2x8x8xf32> -> vector<2x8x8xf32>
    "tpu.trace_stop"() : () -> ()
    %95 = vector.shape_cast %94 : vector<2x8x8xf32> to vector<16x8xf32>
    %96 = arith.truncf %95 : vector<16x8xf32> to vector<16x8xbf16>
    %97 = vector.extract_strided_slice %44 {offsets = [8, 0], sizes = [8, 32], strides = [1, 1]} : vector<32x32xbf16> to vector<8x32xbf16>
    %cst_38 = arith.constant dense<0.000000e+00> : vector<16x32xf32>
    %98 = tpu.matmul %96, %97, %cst_38 {dimension_numbers = #tpu.dot_dimension_numbers<[1], [0], [0], [1], [0, 0, 1, 1], [], []>} : vector<16x8xbf16>, vector<8x32xbf16>, vector<16x32xf32> -> vector<16x32xf32>
    %99 = arith.addf %72, %98 : vector<16x32xf32>
    %100 = vector.extract_strided_slice %42 {offsets = [0, 0, 16], sizes = [2, 8, 8], strides = [1, 1, 1]} : vector<2x8x96xf32> to vector<2x8x8xf32>
    %cst_39 = arith.constant 0.353553385 : f32
    %101 = vector.broadcast %cst_39 : f32 to vector<2x8x8xf32>
    %102 = arith.mulf %100, %101 : vector<2x8x8xf32>
    %103 = arith.truncf %102 : vector<2x8x8xf32> to vector<2x8x8xbf16>
    %104 = vector.extract_strided_slice %42 {offsets = [0, 0, 48], sizes = [2, 8, 8], strides = [1, 1, 1]} : vector<2x8x96xf32> to vector<2x8x8xf32>
    %105 = arith.truncf %104 : vector<2x8x8xf32> to vector<2x8x8xbf16>
    %106 = vector.extract_strided_slice %42 {offsets = [0, 0, 80], sizes = [2, 8, 8], strides = [1, 1, 1]} : vector<2x8x96xf32> to vector<2x8x8xf32>
    %107 = arith.truncf %106 : vector<2x8x8xf32> to vector<2x8x8xbf16>
    "tpu.trace_start"() <{level = 10 : i32, message = "bqd,bkd->bqk"}> : () -> ()
    %cst_40 = arith.constant dense<0.000000e+00> : vector<2x8x8xf32>
    %108 = tpu.matmul %103, %105, %cst_40 {dimension_numbers = #tpu.dot_dimension_numbers<[2], [2], [1], [1], [0, 0, 0, 1, 1, 1], [0], [0]>} : vector<2x8x8xbf16>, vector<2x8x8xbf16>, vector<2x8x8xf32> -> vector<2x8x8xf32>
    "tpu.trace_stop"() : () -> ()
    %109 = arith.addf %108, %4 : vector<2x8x8xf32>
    %cst_41 = arith.constant dense<0xFF800000> : vector<2x8xf32>
    %110 = vector.multi_reduction <maximumf>, %109, %cst_41 [2] : vector<2x8x8xf32> to vector<2x8xf32>
    %111 = vector.shape_cast %110 : vector<2x8xf32> to vector<2x8x1xf32>
    %112 = vector.broadcast %111 : vector<2x8x1xf32> to vector<2x8x8xf32>
    %113 = arith.subf %109, %112 : vector<2x8x8xf32>
    %114 = math.exp %113 : vector<2x8x8xf32>
    %cst_42 = arith.constant dense<0.000000e+00> : vector<2x8xf32>
    %115 = vector.multi_reduction <add>, %114, %cst_42 [2] : vector<2x8x8xf32> to vector<2x8xf32>
    %116 = vector.shape_cast %115 : vector<2x8xf32> to vector<2x8x1xf32>
    %117 = tpu.reciprocal %116 {approx = true} : vector<2x8x1xf32> -> vector<2x8x1xf32>
    %118 = vector.broadcast %117 : vector<2x8x1xf32> to vector<2x8x8xf32>
    %119 = arith.mulf %114, %118 : vector<2x8x8xf32>
    %120 = arith.truncf %119 : vector<2x8x8xf32> to vector<2x8x8xbf16>
    "tpu.trace_start"() <{level = 10 : i32, message = "bqk,bkd->bqd"}> : () -> ()
    %cst_43 = arith.constant dense<0.000000e+00> : vector<2x8x8xf32>
    %121 = tpu.matmul %120, %107, %cst_43 {dimension_numbers = #tpu.dot_dimension_numbers<[2], [1], [1], [2], [0, 0, 0, 1, 1, 2], [0], [0]>} : vector<2x8x8xbf16>, vector<2x8x8xbf16>, vector<2x8x8xf32> -> vector<2x8x8xf32>
    "tpu.trace_stop"() : () -> ()
    %122 = vector.shape_cast %121 : vector<2x8x8xf32> to vector<16x8xf32>
    %123 = arith.truncf %122 : vector<16x8xf32> to vector<16x8xbf16>
    %124 = vector.extract_strided_slice %44 {offsets = [16, 0], sizes = [8, 32], strides = [1, 1]} : vector<32x32xbf16> to vector<8x32xbf16>
    %cst_44 = arith.constant dense<0.000000e+00> : vector<16x32xf32>
    %125 = tpu.matmul %123, %124, %cst_44 {dimension_numbers = #tpu.dot_dimension_numbers<[1], [0], [0], [1], [0, 0, 1, 1], [], []>} : vector<16x8xbf16>, vector<8x32xbf16>, vector<16x32xf32> -> vector<16x32xf32>
    %126 = arith.addf %99, %125 : vector<16x32xf32>
    %127 = vector.extract_strided_slice %42 {offsets = [0, 0, 24], sizes = [2, 8, 8], strides = [1, 1, 1]} : vector<2x8x96xf32> to vector<2x8x8xf32>
    %cst_45 = arith.constant 0.353553385 : f32
    %128 = vector.broadcast %cst_45 : f32 to vector<2x8x8xf32>
    %129 = arith.mulf %127, %128 : vector<2x8x8xf32>
    %130 = arith.truncf %129 : vector<2x8x8xf32> to vector<2x8x8xbf16>
    %131 = vector.extract_strided_slice %42 {offsets = [0, 0, 56], sizes = [2, 8, 8], strides = [1, 1, 1]} : vector<2x8x96xf32> to vector<2x8x8xf32>
    %132 = arith.truncf %131 : vector<2x8x8xf32> to vector<2x8x8xbf16>
    %133 = vector.extract_strided_slice %42 {offsets = [0, 0, 88], sizes = [2, 8, 8], strides = [1, 1, 1]} : vector<2x8x96xf32> to vector<2x8x8xf32>
    %134 = arith.truncf %133 : vector<2x8x8xf32> to vector<2x8x8xbf16>
    "tpu.trace_start"() <{level = 10 : i32, message = "bqd,bkd->bqk"}> : () -> ()
    %cst_46 = arith.constant dense<0.000000e+00> : vector<2x8x8xf32>
    %135 = tpu.matmul %130, %132, %cst_46 {dimension_numbers = #tpu.dot_dimension_numbers<[2], [2], [1], [1], [0, 0, 0, 1, 1, 1], [0], [0]>} : vector<2x8x8xbf16>, vector<2x8x8xbf16>, vector<2x8x8xf32> -> vector<2x8x8xf32>
    "tpu.trace_stop"() : () -> ()
    %136 = arith.addf %135, %4 : vector<2x8x8xf32>
    %cst_47 = arith.constant dense<0xFF800000> : vector<2x8xf32>
    %137 = vector.multi_reduction <maximumf>, %136, %cst_47 [2] : vector<2x8x8xf32> to vector<2x8xf32>
    %138 = vector.shape_cast %137 : vector<2x8xf32> to vector<2x8x1xf32>
    %139 = vector.broadcast %138 : vector<2x8x1xf32> to vector<2x8x8xf32>
    %140 = arith.subf %136, %139 : vector<2x8x8xf32>
    %141 = math.exp %140 : vector<2x8x8xf32>
    %cst_48 = arith.constant dense<0.000000e+00> : vector<2x8xf32>
    %142 = vector.multi_reduction <add>, %141, %cst_48 [2] : vector<2x8x8xf32> to vector<2x8xf32>
    %143 = vector.shape_cast %142 : vector<2x8xf32> to vector<2x8x1xf32>
    %144 = tpu.reciprocal %143 {approx = true} : vector<2x8x1xf32> -> vector<2x8x1xf32>
    %145 = vector.broadcast %144 : vector<2x8x1xf32> to vector<2x8x8xf32>
    %146 = arith.mulf %141, %145 : vector<2x8x8xf32>
    %147 = arith.truncf %146 : vector<2x8x8xf32> to vector<2x8x8xbf16>
    "tpu.trace_start"() <{level = 10 : i32, message = "bqk,bkd->bqd"}> : () -> ()
    %cst_49 = arith.constant dense<0.000000e+00> : vector<2x8x8xf32>
    %148 = tpu.matmul %147, %134, %cst_49 {dimension_numbers = #tpu.dot_dimension_numbers<[2], [1], [1], [2], [0, 0, 0, 1, 1, 2], [0], [0]>} : vector<2x8x8xbf16>, vector<2x8x8xbf16>, vector<2x8x8xf32> -> vector<2x8x8xf32>
    "tpu.trace_stop"() : () -> ()
    %149 = vector.shape_cast %148 : vector<2x8x8xf32> to vector<16x8xf32>
    %150 = arith.truncf %149 : vector<16x8xf32> to vector<16x8xbf16>
    %151 = vector.extract_strided_slice %44 {offsets = [24, 0], sizes = [8, 32], strides = [1, 1]} : vector<32x32xbf16> to vector<8x32xbf16>
    %cst_50 = arith.constant dense<0.000000e+00> : vector<16x32xf32>
    %152 = tpu.matmul %150, %151, %cst_50 {dimension_numbers = #tpu.dot_dimension_numbers<[1], [0], [0], [1], [0, 0, 1, 1], [], []>} : vector<16x8xbf16>, vector<8x32xbf16>, vector<16x32xf32> -> vector<16x32xf32>
    %153 = arith.addf %126, %152 : vector<16x32xf32>
    %154 = arith.addf %5, %153 : vector<16x32xf32>
    %c0_51 = arith.constant 0 : index
    %c0_52 = arith.constant 0 : index
    %c0_53 = arith.constant 0 : index
    %155 = vector.load %arg7[%c0_51, %c0_52, %c0_53] : memref<1x1x32xf32, #tpu.memory_space<vmem>>, vector<1x1x32xf32>
    %156 = vector.shape_cast %155 : vector<1x1x32xf32> to vector<1x32xf32>
    %157 = vector.broadcast %156 : vector<1x32xf32> to vector<16x32xf32>
    %158 = arith.addf %154, %157 : vector<16x32xf32>
    %c0_54 = arith.constant 0 : index
    %c0_55 = arith.constant 0 : index
    %c0_56 = arith.constant 0 : index
    %159 = vector.load %arg14[%c0_54, %c0_55, %c0_56] : memref<1x1x32xf32, #tpu.memory_space<vmem>>, vector<1x1x32xf32>
    %160 = vector.shape_cast %159 : vector<1x1x32xf32> to vector<1x32xf32>
    %c0_57 = arith.constant 0 : index
    %c0_58 = arith.constant 0 : index
    %c0_59 = arith.constant 0 : index
    %161 = vector.load %arg15[%c0_57, %c0_58, %c0_59] : memref<1x1x32xf32, #tpu.memory_space<vmem>>, vector<1x1x32xf32>
    %162 = vector.shape_cast %161 : vector<1x1x32xf32> to vector<1x32xf32>
    %cst_60 = arith.constant dense<0.000000e+00> : vector<16xf32>
    %163 = vector.multi_reduction <add>, %158, %cst_60 [1] : vector<16x32xf32> to vector<16xf32>
    %164 = vector.shape_cast %163 : vector<16xf32> to vector<16x1xf32>
    %cst_61 = arith.constant 3.200000e+01 : f32
    %165 = vector.broadcast %cst_61 : f32 to vector<16x1xf32>
    %166 = arith.divf %164, %165 : vector<16x1xf32>
    %167 = vector.broadcast %166 : vector<16x1xf32> to vector<16x32xf32>
    %168 = arith.subf %158, %167 : vector<16x32xf32>
    %169 = vector.broadcast %166 : vector<16x1xf32> to vector<16x32xf32>
    %170 = arith.subf %158, %169 : vector<16x32xf32>
    %171 = arith.mulf %168, %170 : vector<16x32xf32>
    %cst_62 = arith.constant dense<0.000000e+00> : vector<16xf32>
    %172 = vector.multi_reduction <add>, %171, %cst_62 [1] : vector<16x32xf32> to vector<16xf32>
    %173 = vector.shape_cast %172 : vector<16xf32> to vector<16x1xf32>
    %cst_63 = arith.constant 3.200000e+01 : f32
    %174 = vector.broadcast %cst_63 : f32 to vector<16x1xf32>
    %175 = arith.divf %173, %174 : vector<16x1xf32>
    %176 = vector.broadcast %166 : vector<16x1xf32> to vector<16x32xf32>
    %177 = arith.subf %158, %176 : vector<16x32xf32>
    %cst_64 = arith.constant 9.99999974E-6 : f32
    %178 = vector.broadcast %cst_64 : f32 to vector<16x1xf32>
    %179 = arith.addf %175, %178 : vector<16x1xf32>
    %180 = math.rsqrt %179 : vector<16x1xf32>
    %181 = vector.broadcast %180 : vector<16x1xf32> to vector<16x32xf32>
    %182 = arith.mulf %177, %181 : vector<16x32xf32>
    %183 = vector.broadcast %160 : vector<1x32xf32> to vector<16x32xf32>
    %184 = arith.mulf %182, %183 : vector<16x32xf32>
    %185 = vector.broadcast %162 : vector<1x32xf32> to vector<16x32xf32>
    %186 = arith.addf %184, %185 : vector<16x32xf32>
    %187 = arith.truncf %186 : vector<16x32xf32> to vector<16x32xbf16>
    %c0_65 = arith.constant 0 : index
    %c0_66 = arith.constant 0 : index
    %c0_67 = arith.constant 0 : index
    %188 = vector.load %arg10[%c0_65, %c0_66, %c0_67] : memref<1x32x128xbf16, #tpu.memory_space<vmem>>, vector<1x32x128xbf16>
    %189 = vector.shape_cast %188 : vector<1x32x128xbf16> to vector<32x128xbf16>
    %cst_68 = arith.constant dense<0.000000e+00> : vector<16x128xf32>
    %190 = tpu.matmul %187, %189, %cst_68 {dimension_numbers = #tpu.dot_dimension_numbers<[1], [0], [0], [1], [0, 0, 1, 1], [], []>} : vector<16x32xbf16>, vector<32x128xbf16>, vector<16x128xf32> -> vector<16x128xf32>
    %c0_69 = arith.constant 0 : index
    %c0_70 = arith.constant 0 : index
    %c0_71 = arith.constant 0 : index
    %191 = vector.load %arg11[%c0_69, %c0_70, %c0_71] : memref<1x1x128xf32, #tpu.memory_space<vmem>>, vector<1x1x128xf32>
    %192 = vector.shape_cast %191 : vector<1x1x128xf32> to vector<1x128xf32>
    %193 = vector.broadcast %192 : vector<1x128xf32> to vector<16x128xf32>
    %194 = arith.addf %190, %193 : vector<16x128xf32>
    %cst_72 = arith.constant 1.702000e+00 : f32
    %195 = vector.broadcast %cst_72 : f32 to vector<16x128xf32>
    %196 = arith.mulf %195, %194 : vector<16x128xf32>
    %197 = arith.negf %196 : vector<16x128xf32>
    %198 = math.exp %197 : vector<16x128xf32>
    %cst_73 = arith.constant 1.000000e+00 : f32
    %199 = vector.broadcast %cst_73 : f32 to vector<16x128xf32>
    %200 = arith.addf %199, %198 : vector<16x128xf32>
    %201 = arith.divf %199, %200 : vector<16x128xf32>
    %202 = arith.mulf %194, %201 : vector<16x128xf32>
    %203 = arith.truncf %202 : vector<16x128xf32> to vector<16x128xbf16>
    %c0_74 = arith.constant 0 : index
    %c0_75 = arith.constant 0 : index
    %c0_76 = arith.constant 0 : index
    %204 = vector.load %arg12[%c0_74, %c0_75, %c0_76] : memref<1x128x32xbf16, #tpu.memory_space<vmem>>, vector<1x128x32xbf16>
    %205 = vector.shape_cast %204 : vector<1x128x32xbf16> to vector<128x32xbf16>
    %cst_77 = arith.constant dense<0.000000e+00> : vector<16x32xf32>
    %206 = tpu.matmul %203, %205, %cst_77 {dimension_numbers = #tpu.dot_dimension_numbers<[1], [0], [0], [1], [0, 0, 1, 1], [], []>} : vector<16x128xbf16>, vector<128x32xbf16>, vector<16x32xf32> -> vector<16x32xf32>
    %c0_78 = arith.constant 0 : index
    %c0_79 = arith.constant 0 : index
    %c0_80 = arith.constant 0 : index
    %207 = vector.load %arg13[%c0_78, %c0_79, %c0_80] : memref<1x1x32xf32, #tpu.memory_space<vmem>>, vector<1x1x32xf32>
    %208 = vector.shape_cast %207 : vector<1x1x32xf32> to vector<1x32xf32>
    %209 = vector.broadcast %208 : vector<1x32xf32> to vector<16x32xf32>
    %210 = arith.addf %206, %209 : vector<16x32xf32>
    %211 = arith.addf %158, %210 : vector<16x32xf32>
    %212 = vector.shape_cast %211 : vector<16x32xf32> to vector<2x8x32xf32>
    %c0_81 = arith.constant 0 : index
    %c0_82 = arith.constant 0 : index
    %c0_83 = arith.constant 0 : index
    %213 = vector.load %arg17[%c0_81, %c0_82, %c0_83] : memref<2x8x32xf32, #tpu.memory_space<vmem>>, vector<2x8x32xf32>
    tpu.vector_store %arg17[%c0_81, %c0_82, %c0_83], %212 {strides = array<i32>} : memref<2x8x32xf32, #tpu.memory_space<vmem>>, vector<2x8x32xf32>,
    %c1_i32 = arith.constant 1 : i32
    %214 = arith.cmpi eq, %arg1, %c1_i32 : i32
    %215 = arith.extui %214 : i1 to i32
    %c0_i32_84 = arith.constant 0 : i32
    %216 = arith.cmpi ne, %215, %c0_i32_84 : i32
    scf.if %216 {
      %c0_85 = arith.constant 0 : index
      %c0_86 = arith.constant 0 : index
      %c0_87 = arith.constant 0 : index
      %217 = vector.load %arg17[%c0_85, %c0_86, %c0_87] : memref<2x8x32xf32, #tpu.memory_space<vmem>>, vector<2x8x32xf32>
      %c0_88 = arith.constant 0 : index
      %c0_89 = arith.constant 0 : index
      %c0_90 = arith.constant 0 : index
      %218 = vector.load %arg16[%c0_88, %c0_89, %c0_90] : memref<2x8x32xf32, #tpu.memory_space<vmem>>, vector<2x8x32xf32>
      tpu.vector_store %arg16[%c0_88, %c0_89, %c0_90], %217 {strides = array<i32>} : memref<2x8x32xf32, #tpu.memory_space<vmem>>, vector<2x8x32xf32>,
    } else {
    }
    return
  }
  func.func @transform_0(%arg0: i32, %arg1: i32) -> (i32, i32, i32) {
    %c0_i32 = arith.constant 0 : i32
    %c0_i32_0 = arith.constant 0 : i32
    %c0_i32_1 = arith.constant 0 : i32
    return %arg0, %c0_i32, %c0_i32_0 : i32, i32, i32
  }
  func.func @transform_1(%arg0: i32, %arg1: i32) -> (i32, i32, i32) {
    %c0_i32 = arith.constant 0 : i32
    %c0_i32_0 = arith.constant 0 : i32
    %c0_i32_1 = arith.constant 0 : i32
    return %arg0, %c0_i32, %c0_i32_0 : i32, i32, i32
  }
  func.func @transform_2(%arg0: i32, %arg1: i32) -> (i32, i32, i32) {
    %c0_i32 = arith.constant 0 : i32
    %c0_i32_0 = arith.constant 0 : i32
    %c0_i32_1 = arith.constant 0 : i32
    return %arg1, %c0_i32, %c0_i32_0 : i32, i32, i32
  }
  func.func @transform_3(%arg0: i32, %arg1: i32) -> (i32, i32, i32) {
    %c0_i32 = arith.constant 0 : i32
    %c0_i32_0 = arith.constant 0 : i32
    %c0_i32_1 = arith.constant 0 : i32
    return %arg1, %c0_i32, %c0_i32_0 : i32, i32, i32
  }
  func.func @transform_4(%arg0: i32, %arg1: i32) -> (i32, i32, i32) {
    %c0_i32 = arith.constant 0 : i32
    %c0_i32_0 = arith.constant 0 : i32
    %c0_i32_1 = arith.constant 0 : i32
    return %arg1, %c0_i32, %c0_i32_0 : i32, i32, i32
  }
  func.func @transform_5(%arg0: i32, %arg1: i32) -> (i32, i32, i32) {
    %c0_i32 = arith.constant 0 : i32
    %c0_i32_0 = arith.constant 0 : i32
    %c0_i32_1 = arith.constant 0 : i32
    return %arg1, %c0_i32, %c0_i32_0 : i32, i32, i32
  }
  func.func @transform_6(%arg0: i32, %arg1: i32) -> (i32, i32, i32) {
    %c0_i32 = arith.constant 0 : i32
    %c0_i32_0 = arith.constant 0 : i32
    %c0_i32_1 = arith.constant 0 : i32
    return %arg1, %c0_i32, %c0_i32_0 : i32, i32, i32
  }
  func.func @transform_7(%arg0: i32, %arg1: i32) -> (i32, i32, i32) {
    %c0_i32 = arith.constant 0 : i32
    %c0_i32_0 = arith.constant 0 : i32
    %c0_i32_1 = arith.constant 0 : i32
    return %arg1, %c0_i32, %c0_i32_0 : i32, i32, i32
  }
  func.func @transform_8(%arg0: i32, %arg1: i32) -> (i32, i32, i32) {
    %c0_i32 = arith.constant 0 : i32
    %c0_i32_0 = arith.constant 0 : i32
    %c0_i32_1 = arith.constant 0 : i32
    return %arg1, %c0_i32, %c0_i32_0 : i32, i32, i32
  }
  func.func @transform_9(%arg0: i32, %arg1: i32) -> (i32, i32, i32) {
    %c0_i32 = arith.constant 0 : i32
    %c0_i32_0 = arith.constant 0 : i32
    %c0_i32_1 = arith.constant 0 : i32
    return %arg1, %c0_i32, %c0_i32_0 : i32, i32, i32
  }
  func.func @transform_10(%arg0: i32, %arg1: i32) -> (i32, i32, i32) {
    %c0_i32 = arith.constant 0 : i32
    %c0_i32_0 = arith.constant 0 : i32
    %c0_i32_1 = arith.constant 0 : i32
    return %arg1, %c0_i32, %c0_i32_0 : i32, i32, i32
  }
  func.func @transform_11(%arg0: i32, %arg1: i32) -> (i32, i32, i32) {
    %c0_i32 = arith.constant 0 : i32
    %c0_i32_0 = arith.constant 0 : i32
    %c0_i32_1 = arith.constant 0 : i32
    return %arg1, %c0_i32, %c0_i32_0 : i32, i32, i32
  }
  func.func @transform_12(%arg0: i32, %arg1: i32) -> (i32, i32, i32) {
    %c0_i32 = arith.constant 0 : i32
    %c0_i32_0 = arith.constant 0 : i32
    %c0_i32_1 = arith.constant 0 : i32
    return %arg1, %c0_i32, %c0_i32_0 : i32, i32, i32
  }
  func.func @transform_13(%arg0: i32, %arg1: i32) -> (i32, i32, i32) {
    %c0_i32 = arith.constant 0 : i32
    %c0_i32_0 = arith.constant 0 : i32
    %c0_i32_1 = arith.constant 0 : i32
    return %arg1, %c0_i32, %c0_i32_0 : i32, i32, i32
  }
  func.func @transform_14(%arg0: i32, %arg1: i32) -> (i32, i32, i32) {
    %c0_i32 = arith.constant 0 : i32
    %c0_i32_0 = arith.constant 0 : i32
    %c0_i32_1 = arith.constant 0 : i32
    return %arg0, %c0_i32, %c0_i32_0 : i32, i32, i32
  }
}

</mosaic_0001>

<bundles_post_ra>
// kernel: tpu_custom_call.1
= control target key start
LH: loop header
LB: loop body
LE: loop exit
PB: predicated region body
PF: predicated region fallthrough
CT: control target
= control target key end

     0   :  { %s3311_s0 = inlined_call_operand.vmem [shape: f32[2,8,32], index: 0, kind: input, shape index: {}]   ;;  %s3312_s1 = inlined_call_operand.vmem [shape: f32[2,8,8], index: 1, kind: input, shape index: {}]   ;;  %s3313_s2 = inlined_call_operand.vmem [shape: bf16[2,32,96], index: 2, kind: input, shape index: {}]   ;;  %s3314_s3 = inlined_call_operand.vmem [shape: f32[2,1,96], index: 3, kind: input, shape index: {}]   ;;  %s3315_s4 = inlined_call_operand.vmem [shape: bf16[2,32,32], index: 4, kind: input, shape index: {}]   ;;  %s3316_s5 = inlined_call_operand.vmem [shape: f32[2,1,32], index: 5, kind: input, shape index: {}]   ;;  %s3317_s6 = inlined_call_operand.vmem [shape: f32[2,1,32], index: 6, kind: input, shape index: {}]   ;;  %s3318_s7 = inlined_call_operand.vmem [shape: f32[2,1,32], index: 7, kind: input, shape index: {}]   ;;  %s3319_s8 = inlined_call_operand.vmem [shape: bf16[2,32,128], index: 8, kind: input, shape index: {}]   ;;  %s3320_s9 = inlined_call_operand.vmem [shape: f32[2,1,128], index: 9, kind: input, shape index: {}]   ;;  %s3321_s10 = inlined_call_operand.vmem [shape: bf16[2,128,32], index: 10, kind: input, shape index: {}]   ;;  %s3322_s11 = inlined_call_operand.vmem [shape: f32[2,1,32], index: 11, kind: input, shape index: {}]   ;;  %s3323_s12 = inlined_call_operand.vmem [shape: f32[2,1,32], index: 12, kind: input, shape index: {}]   ;;  %s3324_s13 = inlined_call_operand.vmem [shape: f32[2,1,32], index: 13, kind: input, shape index: {}]   ;;  %s3325_s14 = inlined_call_operand.hbm [shape: f32[2,8,32], index: 14, kind: output, shape index: {}]  }
   0x1   :  { %3330 = sst [smem:[#allocation10_spill]] %s3312_s1 }
   0x2   :  { %3331 = sst [smem:[#allocation11_spill]] %s3313_s2 }
   0x3   :  { %3332 = sst [smem:[#allocation12_spill]] %s3315_s4 }
   0x4   :  { %3333 = sst [smem:[#allocation13_spill]] %s3325_s14 }
   0x5   :  { %19 = vsyncpa [#allocation4], 0  ;;  %s2896_s29 = smov 0   ;;  %s2898_s30 = smov 0  }
   0x6   :  { %s2900_s15 = smov 0  }
   0x7 LB: > { %3334 = sst [smem:[#allocation6_spill]] %s2799_s30  ;;  %s34_s17 = sadd.s32 1, %s2799_s30  ;;  %s2803_s15 = sphi %s2900_s15, %s25_s15   ;;  %s2799_s30 = sphi %s2898_s30, %s3352_s30   ;;  %s2795_s29 = sphi %s2896_s29, %s3351_s29  }
   0x8   : > { %3335 = sst [smem:[#allocation7_spill]] %s2803_s15  ;;  %p35_p0 = scmp.ge.s32.totalorder %s34_s17, 2 }
   0x9   : > { %p2373_p1 = scmp.ge.s32.totalorder %s2803_s15, 1  ;;  %p541_p2 = scmp.lt.s32.totalorder %s2803_s15, 3 }
   0xa   : > { %s3354_s17 = smov (%p35_p0, %s34_s17), 0 }
   0xb   : > { %3336 = sst [smem:[#allocation8_spill]] %s3354_s17  ;;  %p542_p3 = pnand %p2373_p1, %p541_p2 }
   0xd   : > { %545 = sbr.rel (%p542_p3) target bundleno = 4314 (0x10da), region = 76 }
  0x12   : > { %p643_p4 = scmp.lt.s32.totalorder %s2795_s29, 1  ;;  %s3337_s2 = sld [smem:[#allocation11_spill]] }
  0x13   : > { %s3338_s4 = sld [smem:[#allocation12_spill]]  ;;  %p2382_p5 = scmp.ne.s32.totalorder %s2795_s29, 0 }
  0x14   : > { %s2919_s18 = scalar_select %p643_p4, %s2795_s29, 1 }
  0x16   : > { %s2432_s19 = sshll.u32 %s2919_s18, 4  ;;  %s680_s20 = scalar_lea.vmem %s3322_s11, %s2919_s18 }
  0x17   : > { %s683_s23 = scalar_lea.vmem %s3323_s12, %s2919_s18  ;;  %s686_s1 = scalar_lea.vmem %s3324_s13, %s2919_s18 }
  0x18   : > { %s2929_s25 = scalar_lea.vmem %s3337_s2, %s2432_s19  ;;  %s2951_s2 = scalar_lea.vmem %s3319_s8, %s2432_s19 }
  0x19   : > { %s2934_s28 = scalar_lea.vmem %s3338_s4, %s2432_s19  ;;  %s672_s4 = scalar_lea.vmem %s3320_s9, %s2919_s18 }
  0x1a   : > { %3339 = sst [smem:[#allocation9_spill]] %s2934_s28  ;;  %s2435_s28 = sshll.u32 %s2919_s18, 6 }
  0x1b   : > { %s2961_s30 = scalar_lea.vmem %s3321_s10, %s2435_s28  ;;  %692 = sbr.rel (%p2382_p5) target bundleno = 34 (0x22), region = 80 }
  0x20   : > { %v693_v0 = vld [vmem:[%s3311_s0] sm:$0xff]  ;;  %vm695_vm0 = vcmask 261120   ;;  %v694_v1 = vld [vmem:[%s3311_s0 + $0x8] sm:$0xff] }
  0x21   : > { %696 = vst.msk [vmem:[#allocation2] sm:$0xff] %vm695_vm0, %v693_v0  ;;  %697 = vst.msk [vmem:[#allocation2 + $0x8] sm:$0xff] %vm695_vm0, %v694_v1 }
  0x22 PF: > { %vm704_vm1 = vcmask 261120   ;;  %v2693_v16 = vld [vmem:[%s2929_s25 + $0x8] sm:$0xff]   ;;  %v2805_v17 = vmov 0.0   ;;  %vm2806_vm2 = vmmov 0   ;;  %v2694_v18 = vld [vmem:[%s2929_s25] sm:$0xff]   ;;  %s3340_s17 = scalar_lea.vmem %s3317_s6, %s2919_s18  ;;  %s3341_s21 = scalar_lea.vmem %s3318_s7, %s2919_s18  ;;  %vm829_vm3 = vcmask 64512  }
  0x23   : > { %2491 = vmatprep.subr.bf16.mxu1 %v2805_v17  ;;  %2495 = vmatprep.mubr.msk.bf16.mxu1 %vm2806_vm2, %v2805_v17  ;;  %v2383_v27 = vld [vmem:[%s3340_s17] ss:$0 sm:$0xff]  ;;  %s3342_s26 = scalar_lea.vmem %s3314_s3, %s2919_s18  ;;  %s2807_s27 = smov 96   ;;  %vm954_vm4 = vcmask 1043456  }
  0x24   : > { %2492 = vmatpush3.bf16.msra.mxu1 %v2693_v16  ;;  %2517 = vmatprep.subr.bf16.mxu0 %v2805_v17  ;;  %v2384_v31 = vld [vmem:[%s3341_s21] ss:$0 sm:$0xff]  ;;  %s3343_s22 = sld [smem:[#allocation10_spill]]  ;;  %s2808_s14 = smov 64  }
  0x25   : > { %2493 = vmatprep.subr.bf16.mxu1 %v2805_v17  ;;  %2519 = vmatprep.mubr.msk.bf16.mxu0 %vm2806_vm2, %v2805_v17  ;;  %v2385_v36 = vld [vmem:[%s3342_s26] ss:$0 sm:$0xff]  ;;  %s2809_s15 = smov 88   ;;  %s2810_s21 = smov 120  }
  0x26   : > { %s2811_s19 = smov 56   ;;  %s2812_s24 = smov 80  }
  0x27   : > { %s2813_s26 = smov 112   ;;  %s2814_s28 = smov 48  }
  0x28   : > { %v2982_v2 = vld [vmem:[#allocation2] sm:$0xff]  ;;  %v2984_v3 = vld [vmem:[#allocation2 + $0x8] sm:$0xff]  ;;  %2494 = vmatpush3.bf16.msra.mxu1 %v2694_v18  ;;  %s2815_s16 = smov 72   ;;  %s2816_s25 = smov 104  }
  0x29   : > { %v705_v4 = vsel %vm704_vm1, %v2982_v2, 0.0  ;;  %v708_v5 = vsel %vm704_vm1, %v2984_v3, 0.0  ;;  %2499 = vmatprep.subr.bf16.mxu1 %v2805_v17  ;;  %s2817_s17 = smov 40   ;;  %p2427_p6 = scmp.ne.s32.totalorder %s2795_s29, 1 }
  0x2a   : > { %706 = vadd.xlane.f32.xlu0 %v705_v4  ;;  %v3047_v53 = vld [vmem:[%s3343_s22] sm:$0xff]  ;;  %v3054_v60 = vld [vmem:[%s3343_s22 + $0x8] sm:$0xff] }
  0x2e   : > { %709 = vadd.xlane.f32.xlu0 %v708_v5 }
  0xb3   : > { %v707_v6 = vpop.xlane.xlu0 %706 }
  0xb4   : > { %v712_v7 = vmul.f32 0.03125, %v707_v6 }
  0xb6   : > { %v714_v8 = vsub.f32 %v2982_v2, %v712_v7 }
  0xb7   : > { %v710_v9 = vpop.xlane.xlu0 %709 }
  0xb8   : > { %v713_v10 = vmul.f32 0.03125, %v710_v9  ;;  %v716_v11 = vmul.f32 %v714_v8, %v714_v8 }
  0xba   : > { %v715_v12 = vsub.f32 %v2984_v3, %v713_v10  ;;  %v718_v13 = vsel %vm704_vm1, %v716_v11, 0.0 }
  0xbb   : > { %719 = vadd.xlane.f32.xlu1 %v718_v13 }
  0xbc   : > { %v717_v14 = vmul.f32 %v715_v12, %v715_v12 }
  0xbe   : > { %v721_v15 = vsel %vm704_vm1, %v717_v14, 0.0 }
  0xbf   : > { %722 = vadd.xlane.f32.xlu1 %v721_v15 }
 0x144   : > { %v720_v19 = vpop.xlane.xlu1 %719 }
 0x145   : > { %v724_v20 = vmul.f32 0.03125, %v720_v19 }
 0x147   : > { %v726_v21 = vadd.f32 1e-05, %v724_v20 }
 0x148   : > { %v723_v22 = vpop.xlane.xlu1 %722 }
 0x149   : > { %2705 = vrsqrt.f32 %v726_v21  ;;  %v725_v23 = vmul.f32 0.03125, %v723_v22 }
 0x14b   : > { %v727_v24 = vadd.f32 1e-05, %v725_v23 }
 0x14d   : > { %2707 = vrsqrt.f32 %v727_v24 }
 0x156   : > { %v2706_v25 = vpop.eup %2705 }
 0x157   : > { %v730_v26 = vmul.f32 %v2706_v25, %v714_v8 }
 0x159   : > { %v738_v30 = vmul.f32 %v2383_v27, %v730_v26 }
 0x15a   : > { %v2708_v28 = vpop.eup %2707 }
 0x15b   : > { %v731_v29 = vmul.f32 %v2708_v28, %v715_v12  ;;  %v746_v33 = vadd.f32 %v2384_v31, %v738_v30 }
 0x15d   : > { %v739_v32 = vmul.f32 %v2383_v27, %v731_v29 }
 0x15f   : > { %v747_v34 = vadd.f32 %v2384_v31, %v739_v32 }
 0x161   : > { %v748_v35 = vpack.c.bf16 %v747_v34, %v746_v33 }
 0x163   : > { %2496 = vmatmul.mubr.msk.bf16.vlgmr.msra.gmra.mxu1 %vm704_vm1, %v748_v35 }
 0x164   : > { %2501 = vmatprep.mubr.msk.bf16.mxu1 %vm2806_vm2, %v2805_v17 }
 0x223   : > { %v809_v37 = vpop.f32.mrf.mxu1 }
 0x224   : > { %v810_v38 = vadd.f32 %v2385_v36, %v809_v37 }
 0x225   : > { %v2497_v39 = vpop.f32.mrf.mxu1 }
 0x226   : > { %v3022_v40 = vpack.c.bf16 %v810_v38, %v810_v38  ;;  %v820_v47 = vmul.f32 0.35355338, %v810_v38 }
 0x227   : > { %v812_v41 = vpop.f32.mrf.mxu1 }
 0x228   : > { %v813_v42 = vadd.f32 %v2385_v36, %v812_v41  ;;  %827 = vrot.lane.b32.xlu0 %v3022_v40, %s2807_s27  ;;  %v3030_v49 = vpack.c.bf16 %v820_v47, %v820_v47 }
 0x229   : > { %v2498_v43 = vpop.f32.mrf.mxu1 }
 0x22a   : > { %v3025_v44 = vpack.c.bf16 %v813_v42, %v813_v42  ;;  %v821_v51 = vmul.f32 0.35355338, %v813_v42 }
 0x22c   : > { %877 = vrot.lane.b32.xlu1 %v3025_v44, %s2807_s27  ;;  %v3038_v52 = vpack.c.bf16 %v821_v51, %v821_v51  ;;  %s3344_s27 = sld [smem:[#allocation9_spill]] }
 0x29a   : > { %v828_v45 = vpop.permute.xlu0 %827 }
 0x29b   : > { %v834_v46 = vsel %vm829_vm3, %v828_v45, 0 }
 0x29c   : > { %2500 = vmatpush3.bf16.xpose.msra.mxu1 %v834_v46 }
 0x29d   : > { %2505 = vmatprep.subr.bf16.mxu1 %v2805_v17 }
 0x29e   : > { %v878_v48 = vpop.permute.xlu1 %877 }
 0x29f   : > { %v883_v50 = vsel %vm829_vm3, %v878_v48, 0 }
 0x2a3   : > { %2502 = vmatmul.mubr.msk.bf16.vlgmr.msra.gmra.mxu1 %vm829_vm3, %v3030_v49 }
 0x2a4   : > { %2506 = vmatpush3.bf16.xpose.msra.mxu1 %v883_v50  ;;  %2507 = vmatprep.mubr.msk.bf16.mxu1 %vm2806_vm2, %v2805_v17 }
 0x2a5   : > { %2511 = vmatprep.subr.bf16.mxu1 %v2805_v17 }
 0x2ab   : > { %2508 = vmatmul.mubr.msk.bf16.vlgmr.msra.gmra.mxu1 %vm829_vm3, %v3038_v52 }
 0x2ac   : > { %2513 = vmatprep.mubr.msk.bf16.mxu1 %vm2806_vm2, %v2805_v17 }
 0x363   : > { %v870_v54 = vpop.f32.mrf.mxu1 }
 0x364   : > { %v871_v55 = vadd.f32 %v870_v54, %v3047_v53 }
 0x365   : > { %v2503_v56 = vpop.f32.mrf.mxu1 }
 0x366   : > { %v925_v57 = vsel %vm829_vm3, %v871_v55, -inf }
 0x367   : > { %926 = vmax.xlane.f32.xlu1 %v925_v57  ;;  %v873_v58 = vpop.f32.mrf.mxu1 }
 0x369   : > { %v2504_v59 = vpop.f32.mrf.mxu1 }
 0x36b   : > { %v919_v61 = vpop.f32.mrf.mxu1 }
 0x36c   : > { %v920_v62 = vadd.f32 %v919_v61, %v3054_v60 }
 0x36d   : > { %v2509_v63 = vpop.f32.mrf.mxu1 }
 0x36e   : > { %v928_v0 = vsel %vm829_vm3, %v920_v62, -inf }
 0x36f   : > { %929 = vmax.xlane.f32.xlu0 %v928_v0  ;;  %v922_v1 = vpop.f32.mrf.mxu1 }
 0x371   : > { %v2510_v4 = vpop.f32.mrf.mxu1 }
 0x378   : > { %998 = vrot.lane.b32.xlu1 %v3025_v44, %s2808_s14 }
 0x37c   : > { %1050 = vrot.lane.b32.xlu1 %v3022_v40, %s2809_s15 }
 0x3f0   : > { %v927_v5 = vpop.xlane.xlu1 %926 }
 0x3f1   : > { %v931_v6 = vsub.f32 %v871_v55, %v927_v5 }
 0x3f3   : > { %v933_v7 = vmul.f32 1.442695, %v931_v6 }
 0x3f4   : > { %v999_v8 = vpop.permute.xlu1 %998 }
 0x3f5   : > { %2709 = vpow2.f32 %v933_v7  ;;  %v1004_v9 = vsel %vm954_vm4, %v999_v8, 0 }
 0x3f6   : > { %2518 = vmatpush3.bf16.msra.mxu0 %v1004_v9 }
 0x3f7   : > { %2529 = vmatprep.subr.bf16.mxu0 %v2805_v17 }
 0x3f8   : > { %v930_v10 = vpop.xlane.xlu0 %929  ;;  %v1051_v19 = vpop.permute.xlu1 %1050 }
 0x3f9   : > { %v932_v11 = vsub.f32 %v920_v62, %v930_v10  ;;  %v1056_v26 = vsel %vm829_vm3, %v1051_v19, 0 }
 0x3fb   : > { %v935_v12 = vmul.f32 1.442695, %v932_v11 }
 0x3fd   : > { %2711 = vpow2.f32 %v935_v12 }
 0x402   : > { %v2710_v13 = vpop.eup %2709 }
 0x403   : > { %v937_v14 = vsel %vm829_vm3, %v2710_v13, 0.0 }
 0x404   : > { %938 = vadd.xlane.f32.xlu0 %v937_v14 }
 0x40a   : > { %v2712_v15 = vpop.eup %2711 }
 0x40b   : > { %v940_v16 = vsel %vm829_vm3, %v2712_v15, 0.0 }
 0x40c   : > { %941 = vadd.xlane.f32.xlu1 %v940_v16 }
 0x41a   : > { %949 = vrot.lane.b32.xlu0 %v3022_v40, %s2808_s14 }
 0x41d   : > { %1101 = vrot.lane.b32.xlu1 %v3025_v44, %s2809_s15 }
 0x41e   : > { %1048 = vrot.lane.b32.xlu0 %v3030_v49, %s2810_s21 }
 0x421   : > { %1099 = vrot.lane.b32.xlu1 %v3038_v52, %s2810_s21  ;;  %s3345_s21 = scalar_lea.vmem %s3316_s5, %s2919_s18 }
 0x48d   : > { %v939_v18 = vpop.xlane.xlu0 %938 }
 0x48e   : > { %2713 = vrcp.f32 %v939_v18 }
 0x491   : > { %v950_v20 = vpop.permute.xlu0 %949 }
 0x492   : > { %v956_v21 = vsel %vm954_vm4, %v950_v20, 0  ;;  %v816_v20 = vld [vmem:[%s3344_s27] sm:$0xf] }
 0x493   : > { %2512 = vmatpush3.bf16.msra.mxu1 %v956_v21 }
 0x494   : > { %2523 = vmatprep.subr.bf16.mxu1 %v2805_v17 }
 0x495   : > { %v942_v22 = vpop.xlane.xlu1 %941  ;;  %v1049_v31 = vpop.permute.xlu0 %1048 }
 0x496   : > { %2715 = vrcp.f32 %v942_v22 }
 0x499   : > { %v1102_v29 = vpop.permute.xlu1 %1101 }
 0x49a   : > { %v1107_v32 = vsel %vm829_vm3, %v1102_v29, 0 }
 0x49b   : > { %v2714_v23 = vpop.eup %2713 }
 0x49c   : > { %v945_v24 = vmul.f32 %v2714_v23, %v2710_v13  ;;  %v1321_v23 = vsel %vm954_vm4, %v816_v20, 0 }
 0x49d   : > { %v1100_v33 = vpop.permute.xlu1 %1099 }
 0x49e   : > { %v947_v25 = vpack.c.bf16 %v945_v24, %v945_v24 }
 0x4a0   : > { %2514 = vmatmul.mubr.msk.bf16.vlgmr.msra.gmra.mxu1 %vm829_vm3, %v947_v25 }
 0x4a1   : > { %2524 = vmatpush3.bf16.xpose.msra.mxu1 %v1056_v26  ;;  %2525 = vmatprep.mubr.msk.bf16.mxu1 %vm2806_vm2, %v2805_v17 }
 0x4a2   : > { %2535 = vmatprep.subr.bf16.mxu1 %v2805_v17 }
 0x4a3   : > { %v2716_v27 = vpop.eup %2715 }
 0x4a4   : > { %v946_v28 = vmul.f32 %v2716_v27, %v2712_v15 }
 0x4a6   : > { %v948_v30 = vpack.c.bf16 %v946_v28, %v946_v28  ;;  %v817_v28 = vld [vmem:[%s3344_s27 + $0x4] sm:$0xf] }
 0x4a7   : > { %v1274_v29 = vsel %vm954_vm4, %v817_v28, 0 }
 0x4a8   : > { %2520 = vmatmul.mubr.msk.bf16.vlgmr.msra.gmra.mxu0 %vm829_vm3, %v948_v30  ;;  %2526 = vmatmul.mubr.msk.bf16.vlgmr.msra.gmra.mxu1 %vm829_vm3, %v1049_v31 }
 0x4a9   : > { %2530 = vmatpush3.bf16.xpose.msra.mxu0 %v1107_v32  ;;  %2531 = vmatprep.mubr.msk.bf16.mxu0 %vm2806_vm2, %v2805_v17 }
 0x4aa   : > { %2541 = vmatprep.subr.bf16.mxu0 %v2805_v17  ;;  %2537 = vmatprep.mubr.msk.bf16.mxu1 %vm2806_vm2, %v2805_v17 }
 0x4b0   : > { %2532 = vmatmul.mubr.msk.bf16.vlgmr.msra.gmra.mxu0 %vm829_vm3, %v1100_v33 }
 0x4b1   : > { %2543 = vmatprep.mubr.msk.bf16.mxu0 %vm2806_vm2, %v2805_v17 }
 0x560   : > { %v3086_v34 = vpop.f32.mrf.mxu1 }
 0x562   : > { %v2515_v35 = vpop.f32.mrf.mxu1 }
 0x564   : > { %v995_v36 = vpop.f32.mrf.mxu1 }
 0x566   : > { %v2516_v37 = vpop.f32.mrf.mxu1 }
 0x568   : > { %v3088_v38 = vpop.f32.mrf.mxu0  ;;  %v1092_v39 = vpop.f32.mrf.mxu1 }
 0x569   : > { %v1046_v41 = vpack.c.bf16 %v3088_v38, %v3086_v34  ;;  %v1093_v42 = vadd.f32 %v1092_v39, %v3047_v53 }
 0x56a   : > { %v2521_v43 = vpop.f32.mrf.mxu0  ;;  %v2527_v45 = vpop.f32.mrf.mxu1 }
 0x56b   : > { %v1149_v46 = vsel %vm829_vm3, %v1093_v42, -inf }
 0x56c   : > { %v1043_v47 = vpop.f32.mrf.mxu0  ;;  %1150 = vmax.xlane.f32.xlu0 %v1149_v46  ;;  %v1095_v48 = vpop.f32.mrf.mxu1 }
 0x56e   : > { %v2522_v50 = vpop.f32.mrf.mxu0  ;;  %v2528_v51 = vpop.f32.mrf.mxu1 }
 0x570   : > { %v1143_v54 = vpop.f32.mrf.mxu0 }
 0x571   : > { %v1144_v55 = vadd.f32 %v1143_v54, %v3054_v60 }
 0x572   : > { %v2533_v56 = vpop.f32.mrf.mxu0 }
 0x573   : > { %v1152_v57 = vsel %vm829_vm3, %v1144_v55, -inf }
 0x574   : > { %1153 = vmax.xlane.f32.xlu1 %v1152_v57  ;;  %v1146_v58 = vpop.f32.mrf.mxu0 }
 0x576   : > { %v2534_v59 = vpop.f32.mrf.mxu0 }
 0x585   : > { %1221 = vrot.lane.b32.xlu1 %v3025_v44, %s2811_s19 }
 0x589   : > { %1366 = vrot.lane.b32.xlu1 %v3022_v40, %s2812_s24 }
 0x58d   : > { %1416 = vrot.lane.b32.xlu1 %v3025_v44, %s2812_s24 }
 0x591   : > { %1414 = vrot.lane.b32.xlu1 %v3038_v52, %s2813_s26 }
 0x5f5   : > { %v1151_v61 = vpop.xlane.xlu0 %1150 }
 0x5f6   : > { %v1155_v62 = vsub.f32 %v1093_v42, %v1151_v61 }
 0x5f8   : > { %v1157_v63 = vmul.f32 1.442695, %v1155_v62 }
 0x5fa   : > { %2717 = vpow2.f32 %v1157_v63 }
 0x5fd   : > { %v1154_v0 = vpop.xlane.xlu1 %1153 }
 0x5fe   : > { %v1156_v1 = vsub.f32 %v1144_v55, %v1154_v0 }
 0x600   : > { %v1159_v4 = vmul.f32 1.442695, %v1156_v1 }
 0x601   : > { %v1222_v5 = vpop.permute.xlu1 %1221 }
 0x602   : > { %2719 = vpow2.f32 %v1159_v4  ;;  %v1227_v6 = vsel %vm954_vm4, %v1222_v5, 0 }
 0x603   : > { %2542 = vmatpush3.bf16.msra.mxu0 %v1227_v6 }
 0x604   : > { %2553 = vmatprep.subr.bf16.mxu0 %v2805_v17 }
 0x605   : > { %v1367_v24 = vpop.permute.xlu1 %1366 }
 0x606   : > { %v1372_v37 = vsel %vm829_vm3, %v1367_v24, 0 }
 0x607   : > { %v2718_v7 = vpop.eup %2717 }
 0x608   : > { %v1161_v8 = vsel %vm829_vm3, %v2718_v7, 0.0 }
 0x609   : > { %1162 = vadd.xlane.f32.xlu0 %v1161_v8  ;;  %v1417_v25 = vpop.permute.xlu1 %1416 }
 0x60a   : > { %v1422_v26 = vsel %vm829_vm3, %v1417_v25, 0 }
 0x60d   : > { %v1415_v27 = vpop.permute.xlu1 %1414 }
 0x60f   : > { %v2720_v9 = vpop.eup %2719 }
 0x610   : > { %v1164_v10 = vsel %vm829_vm3, %v2720_v9, 0.0 }
 0x611   : > { %1165 = vadd.xlane.f32.xlu0 %v1164_v10 }
 0x627   : > { %1173 = vrot.lane.b32.xlu0 %v3022_v40, %s2811_s19 }
 0x62b   : > { %1364 = vrot.lane.b32.xlu0 %v3030_v49, %s2813_s26 }
 0x692   : > { %v1163_v11 = vpop.xlane.xlu0 %1162 }
 0x693   : > { %2721 = vrcp.f32 %v1163_v11 }
 0x69a   : > { %v1166_v12 = vpop.xlane.xlu0 %1165 }
 0x69b   : > { %2723 = vrcp.f32 %v1166_v12 }
 0x69e   : > { %v1174_v13 = vpop.permute.xlu0 %1173 }
 0x69f   : > { %v1179_v14 = vsel %vm954_vm4, %v1174_v13, 0 }
 0x6a0   : > { %v2722_v15 = vpop.eup %2721  ;;  %2536 = vmatpush3.bf16.msra.mxu1 %v1179_v14 }
 0x6a1   : > { %v1169_v16 = vmul.f32 %v2722_v15, %v2718_v7  ;;  %2547 = vmatprep.subr.bf16.mxu1 %v2805_v17 }
 0x6a2   : > { %v1365_v42 = vpop.permute.xlu0 %1364 }
 0x6a3   : > { %v1171_v18 = vpack.c.bf16 %v1169_v16, %v1169_v16 }
 0x6a5   : > { %2538 = vmatmul.mubr.msk.bf16.vlgmr.msra.gmra.mxu1 %vm829_vm3, %v1171_v18 }
 0x6a6   : > { %2549 = vmatprep.mubr.msk.bf16.mxu1 %vm2806_vm2, %v2805_v17  ;;  %2548 = vmatpush3.bf16.msra.mxu1 %v1274_v29 }
 0x6a7   : > { %2559 = vmatprep.subr.bf16.mxu1 %v2805_v17 }
 0x6a8   : > { %v2724_v19 = vpop.eup %2723 }
 0x6a9   : > { %v1170_v21 = vmul.f32 %v2724_v19, %v2720_v9 }
 0x6ab   : > { %v1172_v22 = vpack.c.bf16 %v1170_v21, %v1170_v21 }
 0x6ad   : > { %2544 = vmatmul.mubr.msk.bf16.vlgmr.msra.gmra.mxu0 %vm829_vm3, %v1172_v22 }
 0x6ae   : > { %2554 = vmatpush3.bf16.msra.mxu0 %v1321_v23  ;;  %2555 = vmatprep.mubr.msk.bf16.mxu0 %vm2806_vm2, %v2805_v17 }
 0x6af   : > { %2565 = vmatprep.subr.bf16.mxu0 %v2805_v17 }
 0x6b5   : > { %2556 = vmatmul.mubr.msk.bf16.vlgmr.msra.gmra.mxu0 %vm829_vm3, %v1046_v41 }
 0x6b6   : > { %2566 = vmatpush3.bf16.xpose.msra.mxu0 %v1422_v26  ;;  %2567 = vmatprep.mubr.msk.bf16.mxu0 %vm2806_vm2, %v2805_v17 }
 0x6b7   : > { %2577 = vmatprep.subr.bf16.mxu0 %v2805_v17 }
 0x6bd   : > { %2568 = vmatmul.mubr.msk.bf16.vlgmr.msra.gmra.mxu0 %vm829_vm3, %v1415_v27 }
 0x6be   : > { %2579 = vmatprep.mubr.msk.bf16.mxu0 %vm2806_vm2, %v2805_v17 }
 0x765   : > { %v1215_v30 = vpop.f32.mrf.mxu1 }
 0x767   : > { %v2539_v31 = vpop.f32.mrf.mxu1 }
 0x769   : > { %v1218_v32 = vpop.f32.mrf.mxu1 }
 0x76b   : > { %v2540_v33 = vpop.f32.mrf.mxu1 }
 0x76c   : > { %v818_v33 = vld [vmem:[%s3344_s27 + $0x8] sm:$0xf] }
 0x76d   : > { %v1263_v34 = vpop.f32.mrf.mxu0 }
 0x76e   : > { %v1269_v35 = vpack.c.bf16 %v1263_v34, %v1215_v30  ;;  %v1589_v34 = vsel %vm954_vm4, %v818_v33, 0 }
 0x76f   : > { %v2545_v36 = vpop.f32.mrf.mxu0 }
 0x770   : > { %2550 = vmatmul.mubr.msk.bf16.vlgmr.msra.gmra.mxu1 %vm829_vm3, %v1269_v35 }
 0x771   : > { %2560 = vmatpush3.bf16.xpose.msra.mxu1 %v1372_v37  ;;  %v1266_v38 = vpop.f32.mrf.mxu0  ;;  %2561 = vmatprep.mubr.msk.bf16.mxu1 %vm2806_vm2, %v2805_v17 }
 0x772   : > { %2571 = vmatprep.subr.bf16.mxu1 %v2805_v17 }
 0x773   : > { %v2546_v39 = vpop.f32.mrf.mxu0 }
 0x775   : > { %v3136_v41 = vpop.f32.mrf.mxu0 }
 0x777   : > { %v2557_v43 = vpop.f32.mrf.mxu0 }
 0x778   : > { %2562 = vmatmul.mubr.msk.bf16.vlgmr.msra.gmra.mxu1 %vm829_vm3, %v1365_v42 }
 0x779   : > { %v3139_v45 = vpop.f32.mrf.mxu0  ;;  %2573 = vmatprep.mubr.msk.bf16.mxu1 %vm2806_vm2, %v2805_v17 }
 0x77b   : > { %v2558_v46 = vpop.f32.mrf.mxu0 }
 0x77d   : > { %v1458_v47 = vpop.f32.mrf.mxu0 }
 0x77e   : > { %v1459_v48 = vadd.f32 %v1458_v47, %v3054_v60 }
 0x77f   : > { %v2569_v50 = vpop.f32.mrf.mxu0 }
 0x780   : > { %v1467_v51 = vsel %vm829_vm3, %v1459_v48, -inf }
 0x781   : > { %1468 = vmax.xlane.f32.xlu1 %v1467_v51  ;;  %v1461_v54 = vpop.f32.mrf.mxu0 }
 0x783   : > { %v2570_v55 = vpop.f32.mrf.mxu0 }
 0x792   : > { %1536 = vrot.lane.b32.xlu1 %v3025_v44, %s2814_s28 }
 0x796   : > { %1636 = vrot.lane.b32.xlu1 %v3022_v40, %s2815_s16 }
 0x79a   : > { %1686 = vrot.lane.b32.xlu1 %v3025_v44, %s2815_s16 }
 0x79e   : > { %1684 = vrot.lane.b32.xlu1 %v3038_v52, %s2816_s25 }
 0x80a   : > { %v1469_v56 = vpop.xlane.xlu1 %1468 }
 0x80b   : > { %v1471_v59 = vsub.f32 %v1459_v48, %v1469_v56 }
 0x80d   : > { %v1474_v61 = vmul.f32 1.442695, %v1471_v59 }
 0x80e   : > { %v1537_v57 = vpop.permute.xlu1 %1536 }
 0x80f   : > { %v1542_v58 = vsel %vm954_vm4, %v1537_v57, 0  ;;  %2725 = vpow2.f32 %v1474_v61 }
 0x810   : > { %2578 = vmatpush3.bf16.msra.mxu0 %v1542_v58 }
 0x811   : > { %2589 = vmatprep.subr.bf16.mxu0 %v2805_v17 }
 0x812   : > { %v1637_v20 = vpop.permute.xlu1 %1636 }
 0x813   : > { %v1642_v22 = vsel %vm829_vm3, %v1637_v20, 0 }
 0x816   : > { %v1687_v43 = vpop.permute.xlu1 %1686 }
 0x817   : > { %v1692_v50 = vsel %vm829_vm3, %v1687_v43, 0 }
 0x81a   : > { %v1685_v54 = vpop.permute.xlu1 %1684 }
 0x81c   : > { %v2726_v7 = vpop.eup %2725 }
 0x81d   : > { %v1479_v10 = vsel %vm829_vm3, %v2726_v7, 0.0 }
 0x830   : > { %v3153_v62 = vpop.f32.mrf.mxu1 }
 0x831   : > { %v1358_v61 = vadd.f32 %v3136_v41, %v3153_v62 }
 0x832   : > { %v2551_v63 = vpop.f32.mrf.mxu1 }
 0x834   : > { %v3155_v0 = vpop.f32.mrf.mxu1 }
 0x836   : > { %v2552_v1 = vpop.f32.mrf.mxu1 }
 0x838   : > { %v1408_v4 = vpop.f32.mrf.mxu1 }
 0x839   : > { %v1409_v5 = vadd.f32 %v1408_v4, %v3047_v53 }
 0x83a   : > { %v2563_v52 = vpop.f32.mrf.mxu1 }
 0x83b   : > { %v1464_v6 = vsel %vm829_vm3, %v1409_v5, -inf }
 0x83c   : > { %1465 = vmax.xlane.f32.xlu0 %v1464_v6  ;;  %v1411_v8 = vpop.f32.mrf.mxu1 }
 0x83e   : > { %v2564_v9 = vpop.f32.mrf.mxu1 }
 0x840   : > { %1480 = vadd.xlane.f32.xlu0 %v1479_v10 }
 0x8c5   : > { %v1466_v11 = vpop.xlane.xlu0 %1465 }
 0x8c6   : > { %v1470_v12 = vsub.f32 %v1409_v5, %v1466_v11  ;;  %v1361_v5 = vadd.f32 %v3139_v45, %v3155_v0 }
 0x8c8   : > { %v1472_v13 = vmul.f32 1.442695, %v1470_v12 }
 0x8c9   : > { %v1481_v14 = vpop.xlane.xlu0 %1480 }
 0x8ca   : > { %2727 = vpow2.f32 %v1472_v13 }
 0x8cb   : > { %2729 = vrcp.f32 %v1481_v14 }
 0x8d7   : > { %v2728_v15 = vpop.eup %2727 }
 0x8d8   : > { %v2730_v16 = vpop.eup %2729  ;;  %v1476_v18 = vsel %vm829_vm3, %v2728_v15, 0.0 }
 0x8d9   : > { %1477 = vadd.xlane.f32.xlu0 %v1476_v18  ;;  %v1485_v19 = vmul.f32 %v2730_v16, %v2726_v7 }
 0x8db   : > { %v1487_v21 = vpack.c.bf16 %v1485_v19, %v1485_v19 }
 0x8dd   : > { %2580 = vmatmul.mubr.msk.bf16.vlgmr.msra.gmra.mxu0 %vm829_vm3, %v1487_v21 }
 0x8de   : > { %2590 = vmatpush3.bf16.xpose.msra.mxu0 %v1642_v22  ;;  %2591 = vmatprep.mubr.msk.bf16.mxu0 %vm2806_vm2, %v2805_v17 }
 0x8df   : > { %2601 = vmatprep.subr.bf16.mxu0 %v2805_v17 }
 0x8ef   : > { %1488 = vrot.lane.b32.xlu0 %v3022_v40, %s2814_s28 }
 0x8f3   : > { %1634 = vrot.lane.b32.xlu0 %v3030_v49, %s2816_s25 }
 0x962   : > { %v1478_v23 = vpop.xlane.xlu0 %1477 }
 0x963   : > { %2731 = vrcp.f32 %v1478_v23 }
 0x966   : > { %v1489_v24 = vpop.permute.xlu0 %1488 }
 0x967   : > { %v1494_v25 = vsel %vm954_vm4, %v1489_v24, 0 }
 0x968   : > { %2572 = vmatpush3.bf16.msra.mxu1 %v1494_v25  ;;  %v819_v25 = vld [vmem:[%s3344_s27 + $0xc] sm:$0xf] }
 0x969   : > { %2583 = vmatprep.subr.bf16.mxu1 %v2805_v17 }
 0x96a   : > { %v1635_v26 = vpop.permute.xlu0 %1634 }
 0x96b   : > { %2592 = vmatmul.mubr.msk.bf16.vlgmr.msra.gmra.mxu0 %vm829_vm3, %v1635_v26  ;;  %v1859_v26 = vsel %vm954_vm4, %v819_v25, 0 }
 0x96c   : > { %2603 = vmatprep.mubr.msk.bf16.mxu0 %vm2806_vm2, %v2805_v17 }
 0x970   : > { %v2732_v27 = vpop.eup %2731 }
 0x971   : > { %v1484_v28 = vmul.f32 %v2732_v27, %v2728_v15 }
 0x973   : > { %v1486_v29 = vpack.c.bf16 %v1484_v28, %v1484_v28 }
 0x975   : > { %2574 = vmatmul.mubr.msk.bf16.vlgmr.msra.gmra.mxu1 %vm829_vm3, %v1486_v29 }
 0x976   : > { %2585 = vmatprep.mubr.msk.bf16.mxu1 %vm2806_vm2, %v2805_v17  ;;  %2584 = vmatpush3.bf16.msra.mxu1 %v1589_v34 }
 0x977   : > { %2595 = vmatprep.subr.bf16.mxu1 %v2805_v17 }
 0x99d   : > { %v1578_v49 = vpop.f32.mrf.mxu0 }
 0x99f   : > { %v2581_v30 = vpop.f32.mrf.mxu0 }
 0x9a1   : > { %v1581_v31 = vpop.f32.mrf.mxu0 }
 0x9a3   : > { %v2582_v32 = vpop.f32.mrf.mxu0 }
 0xa2b   : > { %v1678_v35 = vpop.f32.mrf.mxu0 }
 0xa2c   : > { %v1679_v36 = vadd.f32 %v1678_v35, %v3047_v53 }
 0xa2d   : > { %v2593_v37 = vpop.f32.mrf.mxu0 }
 0xa2e   : > { %v1734_v38 = vsel %vm829_vm3, %v1679_v36, -inf  ;;  %v2409_v37 = vld [vmem:[%s3345_s21] ss:$0 sm:$0xff] }
 0xa2f   : > { %1735 = vmax.xlane.f32.xlu0 %v1734_v38  ;;  %v1681_v39 = vpop.f32.mrf.mxu0 }
 0xa31   : > { %v2594_v42 = vpop.f32.mrf.mxu0 }
 0xa35   : > { %v1530_v46 = vpop.f32.mrf.mxu1 }
 0xa36   : > { %v1584_v47 = vpack.c.bf16 %v1578_v49, %v1530_v46 }
 0xa37   : > { %v2575_v48 = vpop.f32.mrf.mxu1 }
 0xa38   : > { %2586 = vmatmul.mubr.msk.bf16.vlgmr.msra.gmra.mxu1 %vm829_vm3, %v1584_v47 }
 0xa39   : > { %2596 = vmatpush3.bf16.xpose.msra.mxu1 %v1692_v50  ;;  %v1533_v51 = vpop.f32.mrf.mxu1  ;;  %2597 = vmatprep.mubr.msk.bf16.mxu1 %vm2806_vm2, %v2805_v17 }
 0xa3a   : > { %2607 = vmatprep.subr.bf16.mxu1 %v2805_v17 }
 0xa3b   : > { %v2576_v53 = vpop.f32.mrf.mxu1 }
 0xa40   : > { %2598 = vmatmul.mubr.msk.bf16.vlgmr.msra.gmra.mxu1 %vm829_vm3, %v1685_v54 }
 0xa41   : > { %2609 = vmatprep.mubr.msk.bf16.mxu1 %vm2806_vm2, %v2805_v17 }
 0xab8   : > { %v1736_v55 = vpop.xlane.xlu0 %1735 }
 0xab9   : > { %v1740_v56 = vsub.f32 %v1679_v36, %v1736_v55 }
 0xabb   : > { %v1742_v57 = vmul.f32 1.442695, %v1740_v56 }
 0xabd   : > { %2733 = vpow2.f32 %v1742_v57 }
 0xaca   : > { %v2734_v58 = vpop.eup %2733 }
 0xacb   : > { %v1746_v59 = vsel %vm829_vm3, %v2734_v58, 0.0 }
 0xacc   : > { %1747 = vadd.xlane.f32.xlu0 %v1746_v59 }
 0xaf8   : > { %v1625_v63 = vpop.f32.mrf.mxu1 }
 0xaf9   : > { %v1632_v1 = vadd.f32 %v1625_v63, %v1358_v61 }
 0xafa   : > { %v2587_v4 = vpop.f32.mrf.mxu1 }
 0xafb   : > { %v2696_v4 = vld [vmem:[%s2951_s2] sm:$0xff]  }
 0xafc   : > { %v1628_v52 = vpop.f32.mrf.mxu1 }
 0xafd   : > { %v3196_v6 = vadd.f32 %v1628_v52, %v1361_v5 }
 0xafe   : > { %v2588_v7 = vpop.f32.mrf.mxu1 }
 0xb00   : > { %v1728_v8 = vpop.f32.mrf.mxu1 }
 0xb01   : > { %v1729_v9 = vadd.f32 %v1728_v8, %v3054_v60 }
 0xb02   : > { %v2599_v10 = vpop.f32.mrf.mxu1 }
 0xb03   : > { %v1737_v11 = vsel %vm829_vm3, %v1729_v9, -inf }
 0xb04   : > { %1738 = vmax.xlane.f32.xlu1 %v1737_v11  ;;  %v1731_v12 = vpop.f32.mrf.mxu1 }
 0xb05   : > { %v2410_v12 = vld [vmem:[%s683_s23] ss:$0 sm:$0xff] }
 0xb06   : > { %v2600_v13 = vpop.f32.mrf.mxu1 }
 0xb15   : > { %1806 = vrot.lane.b32.xlu1 %v3025_v44, %s2817_s17 }
 0xb55   : > { %v1748_v16 = vpop.xlane.xlu0 %1747 }
 0xb8d   : > { %v1739_v41 = vpop.xlane.xlu1 %1738 }
 0xb8e   : > { %v1741_v62 = vsub.f32 %v1729_v9, %v1739_v41 }
 0xb90   : > { %v1744_v14 = vmul.f32 1.442695, %v1741_v62 }
 0xb91   : > { %v1807_v45 = vpop.permute.xlu1 %1806 }
 0xb92   : > { %2735 = vpow2.f32 %v1744_v14  ;;  %v1812_v0 = vsel %vm954_vm4, %v1807_v45, 0  ;;  %v2411_v14 = vld [vmem:[%s686_s1] ss:$0 sm:$0xff] }
 0xb93   : > { %2608 = vmatpush3.bf16.msra.mxu1 %v1812_v0  ;;  %2737 = vrcp.f32 %v1748_v16  ;;  %v2697_v16 = vld [vmem:[%s2961_s30 + $0x38] sm:$0xff]  }
 0xb94   : > { %2619 = vmatprep.subr.bf16.mxu1 %v2805_v17 }
 0xb9f   : > { %v2736_v60 = vpop.eup %2735 }
 0xba0   : > { %v1749_v15 = vsel %vm829_vm3, %v2736_v60, 0.0  ;;  %v2738_v18 = vpop.eup %2737 }
 0xba1   : > { %1750 = vadd.xlane.f32.xlu0 %v1749_v15  ;;  %v1754_v19 = vmul.f32 %v2738_v18, %v2734_v58  ;;  %v2698_v18 = vld [vmem:[%s2961_s30 + $0x30] sm:$0xff]  }
 0xba3   : > { %v1756_v22 = vpack.c.bf16 %v1754_v19, %v1754_v19  ;;  %v2700_v19 = vld [vmem:[%s2961_s30 + $0x20] sm:$0xff]  }
 0xbb7   : > { %1758 = vrot.lane.b32.xlu0 %v3022_v40, %s2817_s17 }
 0xc2a   : > { %v1751_v44 = vpop.xlane.xlu0 %1750 }
 0xc2b   : > { %2739 = vrcp.f32 %v1751_v44  ;;  %v2699_v44 = vld [vmem:[%s2961_s30 + $0x28] sm:$0xff]  }
 0xc2e   : > { %v1759_v20 = vpop.permute.xlu0 %1758 }
 0xc2f   : > { %v1764_v21 = vsel %vm954_vm4, %v1759_v20, 0  ;;  %v2701_v20 = vld [vmem:[%s2961_s30 + $0x18] sm:$0xff]  }
 0xc30   : > { %2602 = vmatpush3.bf16.msra.mxu0 %v1764_v21  ;;  %v2702_v21 = vld [vmem:[%s2961_s30 + $0x10] sm:$0xff]  }
 0xc31   : > { %2613 = vmatprep.subr.bf16.mxu0 %v2805_v17 }
 0xc33   : > { %2604 = vmatmul.mubr.msk.bf16.vlgmr.msra.gmra.mxu0 %vm829_vm3, %v1756_v22  ;;  %v2703_v22 = vld [vmem:[%s2961_s30 + $0x8] sm:$0xff]  }
 0xc34   : > { %2615 = vmatprep.mubr.msk.bf16.mxu0 %vm2806_vm2, %v2805_v17  ;;  %2614 = vmatpush3.bf16.msra.mxu0 %v1859_v26 }
 0xc35   : > { %2627 = vmatprep.subr.bf16.mxu0 %v2805_v17 }
 0xc38   : > { %v2740_v40 = vpop.eup %2739 }
 0xc39   : > { %v1755_v23 = vmul.f32 %v2740_v40, %v2736_v60  ;;  %v2704_v40 = vld [vmem:[%s2961_s30] sm:$0xff]  }
 0xc3b   : > { %v1757_v24 = vpack.c.bf16 %v1755_v23, %v1755_v23  ;;  %v2412_v23 = vld [vmem:[%s672_s4] ss:$0 sm:$0xff] }
 0xc3d   : > { %2610 = vmatmul.mubr.msk.bf16.vlgmr.msra.gmra.mxu1 %vm829_vm3, %v1757_v24 }
 0xc3e   : > { %2623 = vmatprep.mubr.msk.bf16.mxu1 %vm2806_vm2, %v2805_v17 }
 0xcf3   : > { %v1800_v27 = vpop.f32.mrf.mxu0 }
 0xcf5   : > { %v2605_v28 = vpop.f32.mrf.mxu0 }
 0xcf7   : > { %v1803_v29 = vpop.f32.mrf.mxu0 }
 0xcf9   : > { %v2606_v49 = vpop.f32.mrf.mxu0 }
 0xcfd   : > { %v1848_v30 = vpop.f32.mrf.mxu1 }
 0xcfe   : > { %v1854_v31 = vpack.c.bf16 %v1848_v30, %v1800_v27 }
 0xcff   : > { %v2611_v32 = vpop.f32.mrf.mxu1 }
 0xd00   : > { %2616 = vmatmul.mubr.msk.bf16.vlgmr.msra.gmra.mxu0 %vm829_vm3, %v1854_v31 }
 0xd01   : > { %v1851_v33 = vpop.f32.mrf.mxu1  ;;  %2643 = vmatprep.mubr.msk.bf16.mxu0 %vm2806_vm2, %v2805_v17  ;;  %2628 = vmatpush3.bf16.msra.mxu0 %v2697_v16 }
 0xd02   : > { %2629 = vmatprep.subr.bf16.mxu0 %v2805_v17 }
 0xd03   : > { %v2612_v34 = vpop.f32.mrf.mxu1 }
 0xd05   : > { %2630 = vmatpush3.bf16.msra.mxu0 %v2698_v18 }
 0xd06   : > { %2631 = vmatprep.subr.bf16.mxu0 %v2805_v17 }
 0xd09   : > { %2632 = vmatpush3.bf16.msra.mxu0 %v2699_v44 }
 0xd0a   : > { %2633 = vmatprep.subr.bf16.mxu0 %v2805_v17 }
 0xd0d   : > { %2634 = vmatpush3.bf16.msra.mxu0 %v2700_v19 }
 0xd0e   : > { %2635 = vmatprep.subr.bf16.mxu0 %v2805_v17 }
 0xd11   : > { %2636 = vmatpush3.bf16.msra.mxu0 %v2701_v20 }
 0xd12   : > { %2637 = vmatprep.subr.bf16.mxu0 %v2805_v17 }
 0xd15   : > { %2638 = vmatpush3.bf16.msra.mxu0 %v2702_v21 }
 0xd16   : > { %2639 = vmatprep.subr.bf16.mxu0 %v2805_v17 }
 0xd19   : > { %2640 = vmatpush3.bf16.msra.mxu0 %v2703_v22 }
 0xd1a   : > { %2641 = vmatprep.subr.bf16.mxu0 %v2805_v17 }
 0xd1d   : > { %2642 = vmatpush3.bf16.msra.mxu0 %v2704_v40 }
 0xdc0   : > { %v1895_v35 = vpop.f32.mrf.mxu0 }
 0xdc1   : > { %v1902_v36 = vadd.f32 %v1895_v35, %v1632_v1  ;;  %v2695_v1 = vld [vmem:[%s2951_s2 + $0x8] sm:$0xff]  }
 0xdc2   : > { %v2617_v38 = vpop.f32.mrf.mxu0  ;;  %2620 = vmatpush3.bf16.msra.mxu1 %v2695_v1 }
 0xdc3   : > { %v1904_v39 = vadd.f32 %v1902_v36, %v2982_v2  ;;  %2621 = vmatprep.subr.bf16.mxu1 %v2805_v17 }
 0xdc4   : > { %v1898_v42 = vpop.f32.mrf.mxu0 }
 0xdc5   : > { %v3225_v43 = vadd.f32 %v2409_v37, %v1904_v39  ;;  %v1903_v46 = vadd.f32 %v1898_v42, %v3196_v6 }
 0xdc6   : > { %v2618_v47 = vpop.f32.mrf.mxu0  ;;  %2622 = vmatpush3.bf16.msra.mxu1 %v2696_v4 }
 0xdc7   : > { %v1905_v48 = vadd.f32 %v1903_v46, %v2984_v3  ;;  %v1917_v50 = vsel %vm704_vm1, %v3225_v43, 0.0  ;;  %v2418_v46 = vld [vmem:[%s680_s20] ss:$0 sm:$0xff] }
 0xdc8   : > { %1918 = vadd.xlane.f32.xlu1 %v1917_v50 }
 0xdc9   : > { %v3231_v51 = vadd.f32 %v2409_v37, %v1905_v48 }
 0xdcb   : > { %v1920_v53 = vsel %vm704_vm1, %v3231_v51, 0.0 }
 0xdcc   : > { %1921 = vadd.xlane.f32.xlu0 %v1920_v53 }
 0xe51   : > { %v1919_v2 = vpop.xlane.xlu1 %1918 }
 0xe52   : > { %v1923_v54 = vmul.f32 0.03125, %v1919_v2 }
 0xe54   : > { %v1925_v55 = vsub.f32 %v3225_v43, %v1923_v54 }
 0xe55   : > { %v1922_v56 = vpop.xlane.xlu0 %1921 }
 0xe56   : > { %v1924_v57 = vmul.f32 0.03125, %v1922_v56  ;;  %v1927_v58 = vmul.f32 %v1925_v55, %v1925_v55 }
 0xe58   : > { %v1926_v3 = vsub.f32 %v3231_v51, %v1924_v57  ;;  %v1929_v59 = vsel %vm704_vm1, %v1927_v58, 0.0 }
 0xe59   : > { %1930 = vadd.xlane.f32.xlu0 %v1929_v59 }
 0xe5a   : > { %v1928_v61 = vmul.f32 %v1926_v3, %v1926_v3 }
 0xe5c   : > { %v1932_v63 = vsel %vm704_vm1, %v1928_v61, 0.0 }
 0xe5d   : > { %1933 = vadd.xlane.f32.xlu1 %v1932_v63 }
 0xee2   : > { %v1931_v5 = vpop.xlane.xlu0 %1930 }
 0xee3   : > { %v1935_v52 = vmul.f32 0.03125, %v1931_v5 }
 0xee5   : > { %v1937_v6 = vadd.f32 1e-05, %v1935_v52 }
 0xee6   : > { %v1934_v7 = vpop.xlane.xlu1 %1933 }
 0xee7   : > { %2741 = vrsqrt.f32 %v1937_v6  ;;  %v1936_v8 = vmul.f32 0.03125, %v1934_v7 }
 0xee9   : > { %v1938_v9 = vadd.f32 1e-05, %v1936_v8 }
 0xeeb   : > { %2743 = vrsqrt.f32 %v1938_v9 }
 0xef4   : > { %v2742_v10 = vpop.eup %2741 }
 0xef5   : > { %v1941_v11 = vmul.f32 %v2742_v10, %v1925_v55 }
 0xef7   : > { %v1949_v62 = vmul.f32 %v2410_v12, %v1941_v11 }
 0xef8   : > { %v2744_v13 = vpop.eup %2743 }
 0xef9   : > { %v1942_v41 = vmul.f32 %v2744_v13, %v1926_v3  ;;  %v1957_v0 = vadd.f32 %v2411_v14, %v1949_v62 }
 0xefb   : > { %v1950_v45 = vmul.f32 %v2410_v12, %v1942_v41 }
 0xefd   : > { %v1958_v60 = vadd.f32 %v2411_v14, %v1950_v45 }
 0xeff   : > { %v1959_v15 = vpack.c.bf16 %v1958_v60, %v1957_v0 }
 0xf01   : > { %2624 = vmatmul.mubr.msk.bf16.vlgmr.msra.gmra.mxu1 %vm704_vm1, %v1959_v15 }
 0xfc1   : > { %v2020_v24 = vpop.f32.mrf.mxu1 }
 0xfc2   : > { %v2021_v25 = vadd.f32 %v2412_v23, %v2020_v24 }
 0xfc3   : > { %v2625_v26 = vpop.f32.mrf.mxu1 }
 0xfc4   : > { %v2416_v27 = vmul.f32 -1.702, %v2021_v25 }
 0xfc5   : > { %v2023_v28 = vpop.f32.mrf.mxu1 }
 0xfc6   : > { %v2031_v29 = vmul.f32 1.442695, %v2416_v27  ;;  %v2024_v49 = vadd.f32 %v2412_v23, %v2023_v28 }
 0xfc7   : > { %v2626_v30 = vpop.f32.mrf.mxu1 }
 0xfc8   : > { %2745 = vpow2.f32 %v2031_v29  ;;  %v2417_v31 = vmul.f32 -1.702, %v2024_v49 }
 0xfca   : > { %v2033_v32 = vmul.f32 1.442695, %v2417_v31 }
 0xfcc   : > { %2747 = vpow2.f32 %v2033_v32 }
 0xfd5   : > { %v2746_v17 = vpop.eup %2745 }
 0xfd6   : > { %v2035_v33 = vadd.f32 1.0, %v2746_v17 }
 0xfd8   : > { %2749 = vrcp.f32 %v2035_v33 }
 0xfd9   : > { %v2748_v34 = vpop.eup %2747 }
 0xfda   : > { %v2036_v35 = vadd.f32 1.0, %v2748_v34 }
 0xfdc   : > { %2751 = vrcp.f32 %v2036_v35 }
 0xfe5   : > { %v2750_v36 = vpop.eup %2749 }
 0xfe6   : > { %v2041_v38 = vmul.f32 %v2750_v36, %v2021_v25 }
 0xfe9   : > { %v2752_v37 = vpop.eup %2751 }
 0xfea   : > { %v2042_v39 = vmul.f32 %v2752_v37, %v2024_v49 }
 0xfec   : > { %v2043_v42 = vpack.c.bf16 %v2042_v39, %v2041_v38 }
 0xfee   : > { %2644 = vmatmul.mubr.bf16.vlgmr.msra.gmra.mxu0 %v2043_v42 }
0x10ae   : > { %v2149_v47 = vpop.f32.mrf.mxu0 }
0x10af   : > { %v2150_v48 = vadd.f32 %v2418_v46, %v2149_v47 }
0x10b0   : > { %v2645_v50 = vpop.f32.mrf.mxu0 }
0x10b1   : > { %v2156_v53 = vadd.f32 %v2150_v48, %v3225_v43 }
0x10b2   : > { %v2152_v2 = vpop.f32.mrf.mxu0 }
0x10b3   : > { %2158 = vst.msk [vmem:[#allocation2] sm:$0xff] %vm704_vm1, %v2156_v53  ;;  %v2153_v54 = vadd.f32 %v2418_v46, %v2152_v2  ;;  %2163 = sbr.rel (%p2427_p6) target bundleno = 4288 (0x10c0), region = 84 }
0x10b4   : > { %v2646_v55 = vpop.f32.mrf.mxu0 }
0x10b5   : > { %v2157_v56 = vadd.f32 %v2153_v54, %v3231_v51 }
0x10b7   : > { %2159 = vst.msk [vmem:[#allocation2 + $0x8] sm:$0xff] %vm704_vm1, %v2157_v56 }
0x10ba   : > { %v2164_v57 = vld [vmem:[#allocation2] sm:$0xff] }
0x10bb   : > { %2166 = vst.msk [vmem:[#allocation3] sm:$0xff] %vm704_vm1, %v2164_v57 }
0x10be   : > { %v2165_v58 = vld [vmem:[#allocation2 + $0x8] sm:$0xff] }
0x10bf   : > { %2167 = vst.msk [vmem:[#allocation3 + $0x8] sm:$0xff] %vm704_vm1, %v2165_v58 }
0x10c0 PF: > { %s3346_s18 = sld [smem:[#allocation7_spill]]  ;;  %s2818_s28 = smov [#allocation3]  }
0x10c1   : > { %s2177_s16 = sshll.u32 %s2818_s28, 4  ;;  %s2178_s16 = int_to_ptr.vmem [resolvable:$true] %s2177_s16 }
0x10c2   : > { %s2753_s25 = scalar_lea.vmem %s2178_s16, 256  ;;  %p2760_p11 = scmp.lt.s32.totalorder %s2178_s16, %s2178_s16 }
0x10c3   : > { %p2754_p8 = scmp.ne.s32.totalorder %s2178_s16, %s2753_s25  ;;  %p2761_p12 = scmp.lt.s32.totalorder %s2753_s25, %s2753_s25 }
0x10c5   : > { %p2762_p13 = por %p2761_p12, %p2760_p11 }
0x10c6   : > { %s3347_s20 = sadd.s32 4294967295, %s3346_s18  }
0x10c7   : > { %p3287_p7 = scmp.eq.s32.totalorder %s3347_s20, 1 }
0x10c9   : > { %p2755_p9 = pnand %p2754_p8, %p3287_p7 }
0x10cb   : > { %p2756_p10 = pneg %p2755_p9 }
0x10cd   : > { %p2763_p0 = pnand %p2762_p13, %p2756_p10 }
0x10cf   : > { %2766 = shalt.err (!%p2763_p0)
}
0x10d0   : > { %s2819_s29 = smov 128   ;;  %s2820_s17 = smov 8  }
0x10d1   : > { %s3349_s21 = sld [smem:[#allocation13_spill]] }
0x10d7   : > { %2648 = dma.vmem_to_hbm [thread:$0]  (%p3287_p7), %s2178_s16, 256, %s3349_s21, [#allocation4], %s2819_s29, %s2819_s29, %s2820_s17  }
0x10d8   : > { %2790 = dma.done.wait (%p3287_p7), [#allocation4], 256  }
0x10d9   : > { %2792 = vsyncadd (%p3287_p7), [#allocation4], 4294967040 }
0x10da PF: > { %s3350_s19 = sld [smem:[#allocation7_spill]] }
0x10db   : > { %s3351_s29 = sld [smem:[#allocation6_spill]] }
0x10dc   : > { %s3352_s30 = sld [smem:[#allocation8_spill]] }
0x10e0   : > { %s25_s15 = sadd.s32 1, %s3350_s19  }
0x10e1   : > { %p22_p1 = scmp.ge.s32.totalorder %s25_s15, 4  }
0x10e3   :  { %24 = sbr.rel (!%p22_p1) target bundleno = 7 (0x7), region = 151 }
0x10e8   :  { %2193 = vsyncpa [#allocation4], 1 }
0x10e9   :  { %2195 = vsyncpa [#allocation4 + $0x1], 1 }

</bundles_post_ra>
